<compile_context>
chip_gen: v7x
topology: tpu7x:2x2x1
jax: 0.10.0
libtpu: 0.0.40
codegen_flags: <defaults>
</compile_context>

<pallas_src>
import jax
import jax.numpy as jnp
from jax.experimental import pallas as pl
from jax.experimental.pallas import tpu as pltpu

LN_EPS = 1e-5    # torch.nn.LayerNorm default eps
MSG_EPS = 1e-7   # GENConv message epsilon


# ----------------------------- fused Pallas kernel ---------------------------

def _gipa_fused_kernel(
    x_ref, ea_ref, src_ref, dst_ref,
    ne_w_ref, ne_b_ref, ee_w_ref, ee_b_ref,
    ln_g_ref, ln_b_ref, w1_ref, b1_ref, ln2_g_ref, ln2_b_ref, w2_ref, b2_ref,
    on_g_ref, on_b_ref, ow_ref, ob_ref,
    out_ref,
):
    f32 = jnp.float32
    bf16 = jnp.bfloat16
    N = x_ref.shape[0]
    E = src_ref.shape[0]
    L = w1_ref.shape[0]

    def layer_norm(v, g, b):
        mu = jnp.mean(v, axis=-1, keepdims=True)
        var = jnp.mean((v - mu) ** 2, axis=-1, keepdims=True)
        return (v - mu) * jax.lax.rsqrt(var + LN_EPS) * g + b

    # Encoders (run once, results stay in VMEM for all layers).
    x = jnp.dot(x_ref[...], ne_w_ref[...], preferred_element_type=f32) + ne_b_ref[...]
    ea = jnp.dot(ea_ref[...], ee_w_ref[...], preferred_element_type=f32) + ee_b_ref[...]

    # One-hot gather / scatter matrices built in-kernel from the int32 index vectors.
    src = src_ref[...]                                              # [E, 1] int32
    dst = dst_ref[...]                                              # [1, E] int32
    iota_en = jax.lax.broadcasted_iota(jnp.int32, (E, N), 1)        # node id per lane
    iota_ne = jax.lax.broadcasted_iota(jnp.int32, (N, E), 0)        # node id per row
    src_oh = jnp.where(iota_en == src, 1.0, 0.0).astype(bf16)       # [E, N] gather matrix
    dst_oh_f32 = jnp.where(iota_ne == dst, 1.0, 0.0)                # [N, E] scatter matrix (f32)
    dst_oh = dst_oh_f32.astype(bf16)
    deg = jnp.sum(dst_oh_f32, axis=1, keepdims=True)                # [N, 1] in-degree
    inv_deg = jnp.where(deg > 0.0, 1.0 / jnp.maximum(deg, 1.0), 0.0)  # 0 for isolated nodes

    # Layer loop is fully fused: x never leaves VMEM between layers.
    for l in range(L):
        # DeepGCNLayer 'res+': pre-norm + relu (dropout is eval-mode identity).
        h = jnp.maximum(layer_norm(x, ln_g_ref[l], ln_b_ref[l]), 0.0)
        # GENConv message: relu(h[src] + edge_attr) + eps   (gather via bf16 one-hot on MXU)
        gathered = jnp.dot(src_oh, h.astype(bf16), preferred_element_type=f32)   # [E, H]
        msg = jnp.maximum(gathered + ea, 0.0) + MSG_EPS                           # f32
        # scatter_mean over dst + root feature (f32 accumulation, f32 1/deg scale)
        aggr = jnp.dot(dst_oh, msg.astype(bf16), preferred_element_type=f32)      # [N, H]
        aggr = aggr * inv_deg + h
        # GENConv MLP: H -> 2H -> LayerNorm -> ReLU -> H
        m = jnp.dot(aggr, w1_ref[l], preferred_element_type=f32) + b1_ref[l]
        m = jnp.maximum(layer_norm(m, ln2_g_ref[l], ln2_b_ref[l]), 0.0)
        # 2H -> H plus the 'res+' residual.
        x = jnp.dot(m, w2_ref[l], preferred_element_type=f32) + b2_ref[l] + x

    x = jnp.maximum(layer_norm(x, on_g_ref[...], on_b_ref[...]), 0.0)
    out_ref[...] = jnp.dot(x, ow_ref[...], preferred_element_type=f32) + ob_ref[...]


# ----------------------------- pallas_call glue ------------------------------

def _full_spec(shape):
    return pl.BlockSpec(shape, lambda i, _nd=len(shape): (0,) * _nd)


def gipa_forward(params, x, edge_index, edge_attr):
    # TODO(synk): dropout (p=0.1) and ckpt_grad are training-only; forward here is eval-mode identity.
    src = edge_index[0].astype(jnp.int32).reshape(-1, 1)   # [E, 1]  (row-major for gather one-hot)
    dst = edge_index[1].astype(jnp.int32).reshape(1, -1)   # [1, E]  (lane-major for scatter one-hot)

    N = x.shape[0]
    out_c = params["out_lin"][0].shape[1]

    inputs = (
        x, edge_attr, src, dst,
        params["node_enc"][0], params["node_enc"][1],
        params["edge_enc"][0], params["edge_enc"][1],
        params["ln_g"], params["ln_b"],
        params["w1"], params["b1"],
        params["ln2_g"], params["ln2_b"],
        params["w2"], params["b2"],
        params["out_norm_g"], params["out_norm_b"],
        params["out_lin"][0], params["out_lin"][1],
    )

    return pl.pallas_call(
        _gipa_fused_kernel,
        grid=(1,),
        out_shape=jax.ShapeDtypeStruct((N, out_c), jnp.float32),
        in_specs=[_full_spec(a.shape) for a in inputs],
        out_specs=_full_spec((N, out_c)),
        compiler_params=pltpu.CompilerParams(
            dimension_semantics=("arbitrary",),
        ),
    )(*inputs)


# ----------------------------- parameters ------------------------------------

def _lin_params(key, fan_in, fan_out):
    kw, kb = jax.random.split(key)
    bound = 1.0 / jnp.sqrt(jnp.float32(fan_in))
    w = jax.random.uniform(kw, (fan_in, fan_out), jnp.float32, -bound, bound)
    b = jax.random.uniform(kb, (1, fan_out), jnp.float32, -bound, bound)
    return w, b


def init_params(key, in_channels, edge_channels, hidden, out_channels, num_layers):
    keys = jax.random.split(key, 3 + 2 * num_layers)
    node_w, node_b = _lin_params(keys[0], in_channels, hidden)
    edge_w, edge_b = _lin_params(keys[1], edge_channels, hidden)
    out_w, out_b = _lin_params(keys[2], hidden, out_channels)

    w1s, b1s, w2s, b2s = [], [], [], []
    for i in range(num_layers):
        w1, b1 = _lin_params(keys[3 + 2 * i], hidden, 2 * hidden)
        w2, b2 = _lin_params(keys[4 + 2 * i], 2 * hidden, hidden)
        w1s.append(w1); b1s.append(b1); w2s.append(w2); b2s.append(b2)

    # Per-layer weights are stacked along a leading layer axis so the single fused kernel
    # can slice them with a static index (no per-layer pallas_call).
    # Note: GENConv's learnable temperature `t` only enters the forward for aggr='softmax';
    # with aggr='mean' it is unused.
    return {
        "node_enc": (node_w, node_b),
        "edge_enc": (edge_w, edge_b),
        "out_lin": (out_w, out_b),
        "out_norm_g": jnp.ones((1, hidden), jnp.float32),
        "out_norm_b": jnp.zeros((1, hidden), jnp.float32),
        "ln_g": jnp.ones((num_layers, 1, hidden), jnp.float32),
        "ln_b": jnp.zeros((num_layers, 1, hidden), jnp.float32),
        "w1": jnp.stack(w1s), "b1": jnp.stack(b1s),
        "ln2_g": jnp.ones((num_layers, 1, 2 * hidden), jnp.float32),
        "ln2_b": jnp.zeros((num_layers, 1, 2 * hidden), jnp.float32),
        "w2": jnp.stack(w2s), "b2": jnp.stack(b2s),
    }


# ----------------------------- main -------------------------------------------

if __name__ == "__main__":
    key = jax.random.PRNGKey(0)
    N, E = 16, 48
    in_c, edge_c, hidden, out_c, num_layers = 8, 6, 32, 4, 3

    k_x, k_ei, k_ea, k_p = jax.random.split(key, 4)
    x = jax.random.normal(k_x, (N, in_c), jnp.float32)
    edge_index = jax.random.randint(k_ei, (2, E), 0, N, jnp.int32)
    edge_attr = jax.random.normal(k_ea, (E, edge_c), jnp.float32)

    params = init_params(k_p, in_c, edge_c, hidden, out_c, num_layers)

    out = gipa_forward(params, x, edge_index, edge_attr)
    jax.block_until_ready(out)
    assert out.shape == (N, out_c) and out.dtype == jnp.float32
    assert bool(jnp.all(jnp.isfinite(out)))
    print("KERNEL_OK")
</pallas_src>

<mosaic_0001>
module attributes {stable_mosaic.version = 11 : i64} {
  func.func @_gipa_fused_kernel(%arg0: i32, %arg1: memref<16x8xf32, #tpu.memory_space<vmem>>, %arg2: memref<48x6xf32, #tpu.memory_space<vmem>>, %arg3: memref<48x1xi32, #tpu.memory_space<vmem>>, %arg4: memref<1x48xi32, #tpu.memory_space<vmem>>, %arg5: memref<8x32xf32, #tpu.memory_space<vmem>>, %arg6: memref<1x32xf32, #tpu.memory_space<vmem>>, %arg7: memref<6x32xf32, #tpu.memory_space<vmem>>, %arg8: memref<1x32xf32, #tpu.memory_space<vmem>>, %arg9: memref<3x1x32xf32, #tpu.memory_space<vmem>>, %arg10: memref<3x1x32xf32, #tpu.memory_space<vmem>>, %arg11: memref<3x32x64xf32, #tpu.memory_space<vmem>>, %arg12: memref<3x1x64xf32, #tpu.memory_space<vmem>>, %arg13: memref<3x1x64xf32, #tpu.memory_space<vmem>>, %arg14: memref<3x1x64xf32, #tpu.memory_space<vmem>>, %arg15: memref<3x64x32xf32, #tpu.memory_space<vmem>>, %arg16: memref<3x1x32xf32, #tpu.memory_space<vmem>>, %arg17: memref<1x32xf32, #tpu.memory_space<vmem>>, %arg18: memref<1x32xf32, #tpu.memory_space<vmem>>, %arg19: memref<32x4xf32, #tpu.memory_space<vmem>>, %arg20: memref<1x4xf32, #tpu.memory_space<vmem>>, %arg21: memref<16x4xf32, #tpu.memory_space<vmem>>) attributes {dimension_semantics = [#tpu.dimension_semantics<arbitrary>], iteration_bounds = array<i64: 1>, scalar_prefetch = 0 : i64, scratch_operands = 0 : i64, tpu.core_type = #tpu.core_type<tc>, window_params = [{pipeline_mode = #tpu.pipeline_mode<synchronous>, transform_indices = @transform_0, window_bounds = array<i64: 16, 8>}, {pipeline_mode = #tpu.pipeline_mode<synchronous>, transform_indices = @transform_1, window_bounds = array<i64: 48, 6>}, {pipeline_mode = #tpu.pipeline_mode<synchronous>, transform_indices = @transform_2, window_bounds = array<i64: 48, 1>}, {pipeline_mode = #tpu.pipeline_mode<synchronous>, transform_indices = @transform_3, window_bounds = array<i64: 1, 48>}, {pipeline_mode = #tpu.pipeline_mode<synchronous>, transform_indices = @transform_4, window_bounds = array<i64: 8, 32>}, {pipeline_mode = #tpu.pipeline_mode<synchronous>, transform_indices = @transform_5, window_bounds = array<i64: 1, 32>}, {pipeline_mode = #tpu.pipeline_mode<synchronous>, transform_indices = @transform_6, window_bounds = array<i64: 6, 32>}, {pipeline_mode = #tpu.pipeline_mode<synchronous>, transform_indices = @transform_7, window_bounds = array<i64: 1, 32>}, {pipeline_mode = #tpu.pipeline_mode<synchronous>, transform_indices = @transform_8, window_bounds = array<i64: 3, 1, 32>}, {pipeline_mode = #tpu.pipeline_mode<synchronous>, transform_indices = @transform_9, window_bounds = array<i64: 3, 1, 32>}, {pipeline_mode = #tpu.pipeline_mode<synchronous>, transform_indices = @transform_10, window_bounds = array<i64: 3, 32, 64>}, {pipeline_mode = #tpu.pipeline_mode<synchronous>, transform_indices = @transform_11, window_bounds = array<i64: 3, 1, 64>}, {pipeline_mode = #tpu.pipeline_mode<synchronous>, transform_indices = @transform_12, window_bounds = array<i64: 3, 1, 64>}, {pipeline_mode = #tpu.pipeline_mode<synchronous>, transform_indices = @transform_13, window_bounds = array<i64: 3, 1, 64>}, {pipeline_mode = #tpu.pipeline_mode<synchronous>, transform_indices = @transform_14, window_bounds = array<i64: 3, 64, 32>}, {pipeline_mode = #tpu.pipeline_mode<synchronous>, transform_indices = @transform_15, window_bounds = array<i64: 3, 1, 32>}, {pipeline_mode = #tpu.pipeline_mode<synchronous>, transform_indices = @transform_16, window_bounds = array<i64: 1, 32>}, {pipeline_mode = #tpu.pipeline_mode<synchronous>, transform_indices = @transform_17, window_bounds = array<i64: 1, 32>}, {pipeline_mode = #tpu.pipeline_mode<synchronous>, transform_indices = @transform_18, window_bounds = array<i64: 32, 4>}, {pipeline_mode = #tpu.pipeline_mode<synchronous>, transform_indices = @transform_19, window_bounds = array<i64: 1, 4>}, {pipeline_mode = #tpu.pipeline_mode<synchronous>, transform_indices = @transform_20, window_bounds = array<i64: 16, 4>}]} {
    %c0 = arith.constant 0 : index
    %c0_0 = arith.constant 0 : index
    %0 = vector.load %arg1[%c0, %c0_0] : memref<16x8xf32, #tpu.memory_space<vmem>>, vector<16x8xf32>
    %c0_1 = arith.constant 0 : index
    %c0_2 = arith.constant 0 : index
    %1 = vector.load %arg5[%c0_1, %c0_2] : memref<8x32xf32, #tpu.memory_space<vmem>>, vector<8x32xf32>
    %cst = arith.constant dense<0.000000e+00> : vector<16x32xf32>
    %2 = tpu.matmul %0, %1, %cst {dimension_numbers = #tpu.dot_dimension_numbers<[1], [0], [0], [1], [0, 0, 1, 1], [], []>} : vector<16x8xf32>, vector<8x32xf32>, vector<16x32xf32> -> vector<16x32xf32>
    %c0_3 = arith.constant 0 : index
    %c0_4 = arith.constant 0 : index
    %3 = vector.load %arg6[%c0_3, %c0_4] : memref<1x32xf32, #tpu.memory_space<vmem>>, vector<1x32xf32>
    %4 = vector.broadcast %3 : vector<1x32xf32> to vector<16x32xf32>
    %5 = arith.addf %2, %4 : vector<16x32xf32>
    %c0_5 = arith.constant 0 : index
    %c0_6 = arith.constant 0 : index
    %6 = vector.load %arg2[%c0_5, %c0_6] : memref<48x6xf32, #tpu.memory_space<vmem>>, vector<48x6xf32>
    %c0_7 = arith.constant 0 : index
    %c0_8 = arith.constant 0 : index
    %7 = vector.load %arg7[%c0_7, %c0_8] : memref<6x32xf32, #tpu.memory_space<vmem>>, vector<6x32xf32>
    %cst_9 = arith.constant dense<0.000000e+00> : vector<48x32xf32>
    %8 = tpu.matmul %6, %7, %cst_9 {dimension_numbers = #tpu.dot_dimension_numbers<[1], [0], [0], [1], [0, 0, 1, 1], [], []>} : vector<48x6xf32>, vector<6x32xf32>, vector<48x32xf32> -> vector<48x32xf32>
    %c0_10 = arith.constant 0 : index
    %c0_11 = arith.constant 0 : index
    %9 = vector.load %arg8[%c0_10, %c0_11] : memref<1x32xf32, #tpu.memory_space<vmem>>, vector<1x32xf32>
    %10 = vector.broadcast %9 : vector<1x32xf32> to vector<48x32xf32>
    %11 = arith.addf %8, %10 : vector<48x32xf32>
    %c0_12 = arith.constant 0 : index
    %c0_13 = arith.constant 0 : index
    %12 = vector.load %arg3[%c0_12, %c0_13] : memref<48x1xi32, #tpu.memory_space<vmem>>, vector<48x1xi32>
    %c0_14 = arith.constant 0 : index
    %c0_15 = arith.constant 0 : index
    %13 = vector.load %arg4[%c0_14, %c0_15] : memref<1x48xi32, #tpu.memory_space<vmem>>, vector<1x48xi32>
    %14 = tpu.iota {dimensions = array<i32: 1>} : vector<48x16xi32>
    %15 = tpu.iota {dimensions = array<i32: 0>} : vector<16x48xi32>
    %16 = vector.broadcast %12 : vector<48x1xi32> to vector<48x16xi32>
    %17 = arith.cmpi eq, %14, %16 : vector<48x16xi32>
    %cst_16 = arith.constant 1.000000e+00 : f32
    %cst_17 = arith.constant 0.000000e+00 : f32
    %18 = vector.broadcast %cst_16 : f32 to vector<48x16xf32>
    %19 = vector.broadcast %cst_17 : f32 to vector<48x16xf32>
    %20 = arith.select %17, %18, %19 : vector<48x16xi1>, vector<48x16xf32>
    %21 = arith.truncf %20 : vector<48x16xf32> to vector<48x16xbf16>
    %22 = vector.broadcast %13 : vector<1x48xi32> to vector<16x48xi32>
    %23 = arith.cmpi eq, %15, %22 : vector<16x48xi32>
    %cst_18 = arith.constant 1.000000e+00 : f32
    %cst_19 = arith.constant 0.000000e+00 : f32
    %24 = vector.broadcast %cst_18 : f32 to vector<16x48xf32>
    %25 = vector.broadcast %cst_19 : f32 to vector<16x48xf32>
    %26 = arith.select %23, %24, %25 : vector<16x48xi1>, vector<16x48xf32>
    %27 = arith.truncf %26 : vector<16x48xf32> to vector<16x48xbf16>
    %cst_20 = arith.constant dense<0.000000e+00> : vector<16xf32>
    %28 = vector.multi_reduction <add>, %26, %cst_20 [1] : vector<16x48xf32> to vector<16xf32>
    %29 = vector.shape_cast %28 : vector<16xf32> to vector<16x1xf32>
    %cst_21 = arith.constant 0.000000e+00 : f32
    %30 = vector.broadcast %cst_21 : f32 to vector<16x1xf32>
    %31 = arith.cmpf ogt, %29, %30 : vector<16x1xf32>
    %cst_22 = arith.constant 1.000000e+00 : f32
    %32 = vector.broadcast %cst_22 : f32 to vector<16x1xf32>
    %33 = arith.maximumf %29, %32 : vector<16x1xf32>
    %cst_23 = arith.constant 1.000000e+00 : f32
    %34 = vector.broadcast %cst_23 : f32 to vector<16x1xf32>
    %35 = arith.divf %34, %33 : vector<16x1xf32>
    %cst_24 = arith.constant 0.000000e+00 : f32
    %36 = vector.broadcast %cst_24 : f32 to vector<16x1xf32>
    %37 = arith.select %31, %35, %36 : vector<16x1xi1>, vector<16x1xf32>
    %c0_25 = arith.constant 0 : index
    %c0_26 = arith.constant 0 : index
    %c0_27 = arith.constant 0 : index
    %38 = vector.load %arg9[%c0_25, %c0_26, %c0_27] : memref<3x1x32xf32, #tpu.memory_space<vmem>>, vector<1x1x32xf32>
    %39 = vector.shape_cast %38 : vector<1x1x32xf32> to vector<1x32xf32>
    %c0_28 = arith.constant 0 : index
    %c0_29 = arith.constant 0 : index
    %c0_30 = arith.constant 0 : index
    %40 = vector.load %arg10[%c0_28, %c0_29, %c0_30] : memref<3x1x32xf32, #tpu.memory_space<vmem>>, vector<1x1x32xf32>
    %41 = vector.shape_cast %40 : vector<1x1x32xf32> to vector<1x32xf32>
    %cst_31 = arith.constant dense<0.000000e+00> : vector<16xf32>
    %42 = vector.multi_reduction <add>, %5, %cst_31 [1] : vector<16x32xf32> to vector<16xf32>
    %43 = vector.shape_cast %42 : vector<16xf32> to vector<16x1xf32>
    %cst_32 = arith.constant 3.200000e+01 : f32
    %44 = vector.broadcast %cst_32 : f32 to vector<16x1xf32>
    %45 = arith.divf %43, %44 : vector<16x1xf32>
    %46 = vector.broadcast %45 : vector<16x1xf32> to vector<16x32xf32>
    %47 = arith.subf %5, %46 : vector<16x32xf32>
    %48 = arith.mulf %47, %47 : vector<16x32xf32>
    %cst_33 = arith.constant dense<0.000000e+00> : vector<16xf32>
    %49 = vector.multi_reduction <add>, %48, %cst_33 [1] : vector<16x32xf32> to vector<16xf32>
    %50 = vector.shape_cast %49 : vector<16xf32> to vector<16x1xf32>
    %cst_34 = arith.constant 3.200000e+01 : f32
    %51 = vector.broadcast %cst_34 : f32 to vector<16x1xf32>
    %52 = arith.divf %50, %51 : vector<16x1xf32>
    %53 = vector.broadcast %45 : vector<16x1xf32> to vector<16x32xf32>
    %54 = arith.subf %5, %53 : vector<16x32xf32>
    %cst_35 = arith.constant 9.99999974E-6 : f32
    %55 = vector.broadcast %cst_35 : f32 to vector<16x1xf32>
    %56 = arith.addf %52, %55 : vector<16x1xf32>
    %57 = math.rsqrt %56 : vector<16x1xf32>
    %58 = vector.broadcast %57 : vector<16x1xf32> to vector<16x32xf32>
    %59 = arith.mulf %54, %58 : vector<16x32xf32>
    %60 = vector.broadcast %39 : vector<1x32xf32> to vector<16x32xf32>
    %61 = arith.mulf %59, %60 : vector<16x32xf32>
    %62 = vector.broadcast %41 : vector<1x32xf32> to vector<16x32xf32>
    %63 = arith.addf %61, %62 : vector<16x32xf32>
    %cst_36 = arith.constant 0.000000e+00 : f32
    %64 = vector.broadcast %cst_36 : f32 to vector<16x32xf32>
    %65 = arith.maximumf %63, %64 : vector<16x32xf32>
    %66 = arith.truncf %65 : vector<16x32xf32> to vector<16x32xbf16>
    %cst_37 = arith.constant dense<0.000000e+00> : vector<48x32xf32>
    %67 = tpu.matmul %21, %66, %cst_37 {dimension_numbers = #tpu.dot_dimension_numbers<[1], [0], [0], [1], [0, 0, 1, 1], [], []>} : vector<48x16xbf16>, vector<16x32xbf16>, vector<48x32xf32> -> vector<48x32xf32>
    %68 = arith.addf %67, %11 : vector<48x32xf32>
    %cst_38 = arith.constant 0.000000e+00 : f32
    %69 = vector.broadcast %cst_38 : f32 to vector<48x32xf32>
    %70 = arith.maximumf %68, %69 : vector<48x32xf32>
    %cst_39 = arith.constant 1.000000e-07 : f32
    %71 = vector.broadcast %cst_39 : f32 to vector<48x32xf32>
    %72 = arith.addf %70, %71 : vector<48x32xf32>
    %73 = arith.truncf %72 : vector<48x32xf32> to vector<48x32xbf16>
    %cst_40 = arith.constant dense<0.000000e+00> : vector<16x32xf32>
    %74 = tpu.matmul %27, %73, %cst_40 {dimension_numbers = #tpu.dot_dimension_numbers<[1], [0], [0], [1], [0, 0, 1, 1], [], []>} : vector<16x48xbf16>, vector<48x32xbf16>, vector<16x32xf32> -> vector<16x32xf32>
    %75 = vector.broadcast %37 : vector<16x1xf32> to vector<16x32xf32>
    %76 = arith.mulf %74, %75 : vector<16x32xf32>
    %77 = arith.addf %76, %65 : vector<16x32xf32>
    %c0_41 = arith.constant 0 : index
    %c0_42 = arith.constant 0 : index
    %c0_43 = arith.constant 0 : index
    %78 = vector.load %arg11[%c0_41, %c0_42, %c0_43] : memref<3x32x64xf32, #tpu.memory_space<vmem>>, vector<1x32x64xf32>
    %79 = vector.shape_cast %78 : vector<1x32x64xf32> to vector<32x64xf32>
    %cst_44 = arith.constant dense<0.000000e+00> : vector<16x64xf32>
    %80 = tpu.matmul %77, %79, %cst_44 {dimension_numbers = #tpu.dot_dimension_numbers<[1], [0], [0], [1], [0, 0, 1, 1], [], []>} : vector<16x32xf32>, vector<32x64xf32>, vector<16x64xf32> -> vector<16x64xf32>
    %c0_45 = arith.constant 0 : index
    %c0_46 = arith.constant 0 : index
    %c0_47 = arith.constant 0 : index
    %81 = vector.load %arg12[%c0_45, %c0_46, %c0_47] : memref<3x1x64xf32, #tpu.memory_space<vmem>>, vector<1x1x64xf32>
    %82 = vector.shape_cast %81 : vector<1x1x64xf32> to vector<1x64xf32>
    %83 = vector.broadcast %82 : vector<1x64xf32> to vector<16x64xf32>
    %84 = arith.addf %80, %83 : vector<16x64xf32>
    %c0_48 = arith.constant 0 : index
    %c0_49 = arith.constant 0 : index
    %c0_50 = arith.constant 0 : index
    %85 = vector.load %arg13[%c0_48, %c0_49, %c0_50] : memref<3x1x64xf32, #tpu.memory_space<vmem>>, vector<1x1x64xf32>
    %86 = vector.shape_cast %85 : vector<1x1x64xf32> to vector<1x64xf32>
    %c0_51 = arith.constant 0 : index
    %c0_52 = arith.constant 0 : index
    %c0_53 = arith.constant 0 : index
    %87 = vector.load %arg14[%c0_51, %c0_52, %c0_53] : memref<3x1x64xf32, #tpu.memory_space<vmem>>, vector<1x1x64xf32>
    %88 = vector.shape_cast %87 : vector<1x1x64xf32> to vector<1x64xf32>
    %cst_54 = arith.constant dense<0.000000e+00> : vector<16xf32>
    %89 = vector.multi_reduction <add>, %84, %cst_54 [1] : vector<16x64xf32> to vector<16xf32>
    %90 = vector.shape_cast %89 : vector<16xf32> to vector<16x1xf32>
    %cst_55 = arith.constant 6.400000e+01 : f32
    %91 = vector.broadcast %cst_55 : f32 to vector<16x1xf32>
    %92 = arith.divf %90, %91 : vector<16x1xf32>
    %93 = vector.broadcast %92 : vector<16x1xf32> to vector<16x64xf32>
    %94 = arith.subf %84, %93 : vector<16x64xf32>
    %95 = arith.mulf %94, %94 : vector<16x64xf32>
    %cst_56 = arith.constant dense<0.000000e+00> : vector<16xf32>
    %96 = vector.multi_reduction <add>, %95, %cst_56 [1] : vector<16x64xf32> to vector<16xf32>
    %97 = vector.shape_cast %96 : vector<16xf32> to vector<16x1xf32>
    %cst_57 = arith.constant 6.400000e+01 : f32
    %98 = vector.broadcast %cst_57 : f32 to vector<16x1xf32>
    %99 = arith.divf %97, %98 : vector<16x1xf32>
    %100 = vector.broadcast %92 : vector<16x1xf32> to vector<16x64xf32>
    %101 = arith.subf %84, %100 : vector<16x64xf32>
    %cst_58 = arith.constant 9.99999974E-6 : f32
    %102 = vector.broadcast %cst_58 : f32 to vector<16x1xf32>
    %103 = arith.addf %99, %102 : vector<16x1xf32>
    %104 = math.rsqrt %103 : vector<16x1xf32>
    %105 = vector.broadcast %104 : vector<16x1xf32> to vector<16x64xf32>
    %106 = arith.mulf %101, %105 : vector<16x64xf32>
    %107 = vector.broadcast %86 : vector<1x64xf32> to vector<16x64xf32>
    %108 = arith.mulf %106, %107 : vector<16x64xf32>
    %109 = vector.broadcast %88 : vector<1x64xf32> to vector<16x64xf32>
    %110 = arith.addf %108, %109 : vector<16x64xf32>
    %cst_59 = arith.constant 0.000000e+00 : f32
    %111 = vector.broadcast %cst_59 : f32 to vector<16x64xf32>
    %112 = arith.maximumf %110, %111 : vector<16x64xf32>
    %c0_60 = arith.constant 0 : index
    %c0_61 = arith.constant 0 : index
    %c0_62 = arith.constant 0 : index
    %113 = vector.load %arg15[%c0_60, %c0_61, %c0_62] : memref<3x64x32xf32, #tpu.memory_space<vmem>>, vector<1x64x32xf32>
    %114 = vector.shape_cast %113 : vector<1x64x32xf32> to vector<64x32xf32>
    %cst_63 = arith.constant dense<0.000000e+00> : vector<16x32xf32>
    %115 = tpu.matmul %112, %114, %cst_63 {dimension_numbers = #tpu.dot_dimension_numbers<[1], [0], [0], [1], [0, 0, 1, 1], [], []>} : vector<16x64xf32>, vector<64x32xf32>, vector<16x32xf32> -> vector<16x32xf32>
    %c0_64 = arith.constant 0 : index
    %c0_65 = arith.constant 0 : index
    %c0_66 = arith.constant 0 : index
    %116 = vector.load %arg16[%c0_64, %c0_65, %c0_66] : memref<3x1x32xf32, #tpu.memory_space<vmem>>, vector<1x1x32xf32>
    %117 = vector.shape_cast %116 : vector<1x1x32xf32> to vector<1x32xf32>
    %118 = vector.broadcast %117 : vector<1x32xf32> to vector<16x32xf32>
    %119 = arith.addf %115, %118 : vector<16x32xf32>
    %120 = arith.addf %119, %5 : vector<16x32xf32>
    %c1 = arith.constant 1 : index
    %c0_67 = arith.constant 0 : index
    %c0_68 = arith.constant 0 : index
    %121 = vector.load %arg9[%c1, %c0_67, %c0_68] : memref<3x1x32xf32, #tpu.memory_space<vmem>>, vector<1x1x32xf32>
    %122 = vector.shape_cast %121 : vector<1x1x32xf32> to vector<1x32xf32>
    %c1_69 = arith.constant 1 : index
    %c0_70 = arith.constant 0 : index
    %c0_71 = arith.constant 0 : index
    %123 = vector.load %arg10[%c1_69, %c0_70, %c0_71] : memref<3x1x32xf32, #tpu.memory_space<vmem>>, vector<1x1x32xf32>
    %124 = vector.shape_cast %123 : vector<1x1x32xf32> to vector<1x32xf32>
    %cst_72 = arith.constant dense<0.000000e+00> : vector<16xf32>
    %125 = vector.multi_reduction <add>, %120, %cst_72 [1] : vector<16x32xf32> to vector<16xf32>
    %126 = vector.shape_cast %125 : vector<16xf32> to vector<16x1xf32>
    %cst_73 = arith.constant 3.200000e+01 : f32
    %127 = vector.broadcast %cst_73 : f32 to vector<16x1xf32>
    %128 = arith.divf %126, %127 : vector<16x1xf32>
    %129 = vector.broadcast %128 : vector<16x1xf32> to vector<16x32xf32>
    %130 = arith.subf %120, %129 : vector<16x32xf32>
    %131 = arith.mulf %130, %130 : vector<16x32xf32>
    %cst_74 = arith.constant dense<0.000000e+00> : vector<16xf32>
    %132 = vector.multi_reduction <add>, %131, %cst_74 [1] : vector<16x32xf32> to vector<16xf32>
    %133 = vector.shape_cast %132 : vector<16xf32> to vector<16x1xf32>
    %cst_75 = arith.constant 3.200000e+01 : f32
    %134 = vector.broadcast %cst_75 : f32 to vector<16x1xf32>
    %135 = arith.divf %133, %134 : vector<16x1xf32>
    %136 = vector.broadcast %128 : vector<16x1xf32> to vector<16x32xf32>
    %137 = arith.subf %120, %136 : vector<16x32xf32>
    %cst_76 = arith.constant 9.99999974E-6 : f32
    %138 = vector.broadcast %cst_76 : f32 to vector<16x1xf32>
    %139 = arith.addf %135, %138 : vector<16x1xf32>
    %140 = math.rsqrt %139 : vector<16x1xf32>
    %141 = vector.broadcast %140 : vector<16x1xf32> to vector<16x32xf32>
    %142 = arith.mulf %137, %141 : vector<16x32xf32>
    %143 = vector.broadcast %122 : vector<1x32xf32> to vector<16x32xf32>
    %144 = arith.mulf %142, %143 : vector<16x32xf32>
    %145 = vector.broadcast %124 : vector<1x32xf32> to vector<16x32xf32>
    %146 = arith.addf %144, %145 : vector<16x32xf32>
    %cst_77 = arith.constant 0.000000e+00 : f32
    %147 = vector.broadcast %cst_77 : f32 to vector<16x32xf32>
    %148 = arith.maximumf %146, %147 : vector<16x32xf32>
    %149 = arith.truncf %148 : vector<16x32xf32> to vector<16x32xbf16>
    %cst_78 = arith.constant dense<0.000000e+00> : vector<48x32xf32>
    %150 = tpu.matmul %21, %149, %cst_78 {dimension_numbers = #tpu.dot_dimension_numbers<[1], [0], [0], [1], [0, 0, 1, 1], [], []>} : vector<48x16xbf16>, vector<16x32xbf16>, vector<48x32xf32> -> vector<48x32xf32>
    %151 = arith.addf %150, %11 : vector<48x32xf32>
    %cst_79 = arith.constant 0.000000e+00 : f32
    %152 = vector.broadcast %cst_79 : f32 to vector<48x32xf32>
    %153 = arith.maximumf %151, %152 : vector<48x32xf32>
    %cst_80 = arith.constant 1.000000e-07 : f32
    %154 = vector.broadcast %cst_80 : f32 to vector<48x32xf32>
    %155 = arith.addf %153, %154 : vector<48x32xf32>
    %156 = arith.truncf %155 : vector<48x32xf32> to vector<48x32xbf16>
    %cst_81 = arith.constant dense<0.000000e+00> : vector<16x32xf32>
    %157 = tpu.matmul %27, %156, %cst_81 {dimension_numbers = #tpu.dot_dimension_numbers<[1], [0], [0], [1], [0, 0, 1, 1], [], []>} : vector<16x48xbf16>, vector<48x32xbf16>, vector<16x32xf32> -> vector<16x32xf32>
    %158 = vector.broadcast %37 : vector<16x1xf32> to vector<16x32xf32>
    %159 = arith.mulf %157, %158 : vector<16x32xf32>
    %160 = arith.addf %159, %148 : vector<16x32xf32>
    %c1_82 = arith.constant 1 : index
    %c0_83 = arith.constant 0 : index
    %c0_84 = arith.constant 0 : index
    %161 = vector.load %arg11[%c1_82, %c0_83, %c0_84] : memref<3x32x64xf32, #tpu.memory_space<vmem>>, vector<1x32x64xf32>
    %162 = vector.shape_cast %161 : vector<1x32x64xf32> to vector<32x64xf32>
    %cst_85 = arith.constant dense<0.000000e+00> : vector<16x64xf32>
    %163 = tpu.matmul %160, %162, %cst_85 {dimension_numbers = #tpu.dot_dimension_numbers<[1], [0], [0], [1], [0, 0, 1, 1], [], []>} : vector<16x32xf32>, vector<32x64xf32>, vector<16x64xf32> -> vector<16x64xf32>
    %c1_86 = arith.constant 1 : index
    %c0_87 = arith.constant 0 : index
    %c0_88 = arith.constant 0 : index
    %164 = vector.load %arg12[%c1_86, %c0_87, %c0_88] : memref<3x1x64xf32, #tpu.memory_space<vmem>>, vector<1x1x64xf32>
    %165 = vector.shape_cast %164 : vector<1x1x64xf32> to vector<1x64xf32>
    %166 = vector.broadcast %165 : vector<1x64xf32> to vector<16x64xf32>
    %167 = arith.addf %163, %166 : vector<16x64xf32>
    %c1_89 = arith.constant 1 : index
    %c0_90 = arith.constant 0 : index
    %c0_91 = arith.constant 0 : index
    %168 = vector.load %arg13[%c1_89, %c0_90, %c0_91] : memref<3x1x64xf32, #tpu.memory_space<vmem>>, vector<1x1x64xf32>
    %169 = vector.shape_cast %168 : vector<1x1x64xf32> to vector<1x64xf32>
    %c1_92 = arith.constant 1 : index
    %c0_93 = arith.constant 0 : index
    %c0_94 = arith.constant 0 : index
    %170 = vector.load %arg14[%c1_92, %c0_93, %c0_94] : memref<3x1x64xf32, #tpu.memory_space<vmem>>, vector<1x1x64xf32>
    %171 = vector.shape_cast %170 : vector<1x1x64xf32> to vector<1x64xf32>
    %cst_95 = arith.constant dense<0.000000e+00> : vector<16xf32>
    %172 = vector.multi_reduction <add>, %167, %cst_95 [1] : vector<16x64xf32> to vector<16xf32>
    %173 = vector.shape_cast %172 : vector<16xf32> to vector<16x1xf32>
    %cst_96 = arith.constant 6.400000e+01 : f32
    %174 = vector.broadcast %cst_96 : f32 to vector<16x1xf32>
    %175 = arith.divf %173, %174 : vector<16x1xf32>
    %176 = vector.broadcast %175 : vector<16x1xf32> to vector<16x64xf32>
    %177 = arith.subf %167, %176 : vector<16x64xf32>
    %178 = arith.mulf %177, %177 : vector<16x64xf32>
    %cst_97 = arith.constant dense<0.000000e+00> : vector<16xf32>
    %179 = vector.multi_reduction <add>, %178, %cst_97 [1] : vector<16x64xf32> to vector<16xf32>
    %180 = vector.shape_cast %179 : vector<16xf32> to vector<16x1xf32>
    %cst_98 = arith.constant 6.400000e+01 : f32
    %181 = vector.broadcast %cst_98 : f32 to vector<16x1xf32>
    %182 = arith.divf %180, %181 : vector<16x1xf32>
    %183 = vector.broadcast %175 : vector<16x1xf32> to vector<16x64xf32>
    %184 = arith.subf %167, %183 : vector<16x64xf32>
    %cst_99 = arith.constant 9.99999974E-6 : f32
    %185 = vector.broadcast %cst_99 : f32 to vector<16x1xf32>
    %186 = arith.addf %182, %185 : vector<16x1xf32>
    %187 = math.rsqrt %186 : vector<16x1xf32>
    %188 = vector.broadcast %187 : vector<16x1xf32> to vector<16x64xf32>
    %189 = arith.mulf %184, %188 : vector<16x64xf32>
    %190 = vector.broadcast %169 : vector<1x64xf32> to vector<16x64xf32>
    %191 = arith.mulf %189, %190 : vector<16x64xf32>
    %192 = vector.broadcast %171 : vector<1x64xf32> to vector<16x64xf32>
    %193 = arith.addf %191, %192 : vector<16x64xf32>
    %cst_100 = arith.constant 0.000000e+00 : f32
    %194 = vector.broadcast %cst_100 : f32 to vector<16x64xf32>
    %195 = arith.maximumf %193, %194 : vector<16x64xf32>
    %c1_101 = arith.constant 1 : index
    %c0_102 = arith.constant 0 : index
    %c0_103 = arith.constant 0 : index
    %196 = vector.load %arg15[%c1_101, %c0_102, %c0_103] : memref<3x64x32xf32, #tpu.memory_space<vmem>>, vector<1x64x32xf32>
    %197 = vector.shape_cast %196 : vector<1x64x32xf32> to vector<64x32xf32>
    %cst_104 = arith.constant dense<0.000000e+00> : vector<16x32xf32>
    %198 = tpu.matmul %195, %197, %cst_104 {dimension_numbers = #tpu.dot_dimension_numbers<[1], [0], [0], [1], [0, 0, 1, 1], [], []>} : vector<16x64xf32>, vector<64x32xf32>, vector<16x32xf32> -> vector<16x32xf32>
    %c1_105 = arith.constant 1 : index
    %c0_106 = arith.constant 0 : index
    %c0_107 = arith.constant 0 : index
    %199 = vector.load %arg16[%c1_105, %c0_106, %c0_107] : memref<3x1x32xf32, #tpu.memory_space<vmem>>, vector<1x1x32xf32>
    %200 = vector.shape_cast %199 : vector<1x1x32xf32> to vector<1x32xf32>
    %201 = vector.broadcast %200 : vector<1x32xf32> to vector<16x32xf32>
    %202 = arith.addf %198, %201 : vector<16x32xf32>
    %203 = arith.addf %202, %120 : vector<16x32xf32>
    %c2 = arith.constant 2 : index
    %c0_108 = arith.constant 0 : index
    %c0_109 = arith.constant 0 : index
    %204 = vector.load %arg9[%c2, %c0_108, %c0_109] : memref<3x1x32xf32, #tpu.memory_space<vmem>>, vector<1x1x32xf32>
    %205 = vector.shape_cast %204 : vector<1x1x32xf32> to vector<1x32xf32>
    %c2_110 = arith.constant 2 : index
    %c0_111 = arith.constant 0 : index
    %c0_112 = arith.constant 0 : index
    %206 = vector.load %arg10[%c2_110, %c0_111, %c0_112] : memref<3x1x32xf32, #tpu.memory_space<vmem>>, vector<1x1x32xf32>
    %207 = vector.shape_cast %206 : vector<1x1x32xf32> to vector<1x32xf32>
    %cst_113 = arith.constant dense<0.000000e+00> : vector<16xf32>
    %208 = vector.multi_reduction <add>, %203, %cst_113 [1] : vector<16x32xf32> to vector<16xf32>
    %209 = vector.shape_cast %208 : vector<16xf32> to vector<16x1xf32>
    %cst_114 = arith.constant 3.200000e+01 : f32
    %210 = vector.broadcast %cst_114 : f32 to vector<16x1xf32>
    %211 = arith.divf %209, %210 : vector<16x1xf32>
    %212 = vector.broadcast %211 : vector<16x1xf32> to vector<16x32xf32>
    %213 = arith.subf %203, %212 : vector<16x32xf32>
    %214 = arith.mulf %213, %213 : vector<16x32xf32>
    %cst_115 = arith.constant dense<0.000000e+00> : vector<16xf32>
    %215 = vector.multi_reduction <add>, %214, %cst_115 [1] : vector<16x32xf32> to vector<16xf32>
    %216 = vector.shape_cast %215 : vector<16xf32> to vector<16x1xf32>
    %cst_116 = arith.constant 3.200000e+01 : f32
    %217 = vector.broadcast %cst_116 : f32 to vector<16x1xf32>
    %218 = arith.divf %216, %217 : vector<16x1xf32>
    %219 = vector.broadcast %211 : vector<16x1xf32> to vector<16x32xf32>
    %220 = arith.subf %203, %219 : vector<16x32xf32>
    %cst_117 = arith.constant 9.99999974E-6 : f32
    %221 = vector.broadcast %cst_117 : f32 to vector<16x1xf32>
    %222 = arith.addf %218, %221 : vector<16x1xf32>
    %223 = math.rsqrt %222 : vector<16x1xf32>
    %224 = vector.broadcast %223 : vector<16x1xf32> to vector<16x32xf32>
    %225 = arith.mulf %220, %224 : vector<16x32xf32>
    %226 = vector.broadcast %205 : vector<1x32xf32> to vector<16x32xf32>
    %227 = arith.mulf %225, %226 : vector<16x32xf32>
    %228 = vector.broadcast %207 : vector<1x32xf32> to vector<16x32xf32>
    %229 = arith.addf %227, %228 : vector<16x32xf32>
    %cst_118 = arith.constant 0.000000e+00 : f32
    %230 = vector.broadcast %cst_118 : f32 to vector<16x32xf32>
    %231 = arith.maximumf %229, %230 : vector<16x32xf32>
    %232 = arith.truncf %231 : vector<16x32xf32> to vector<16x32xbf16>
    %cst_119 = arith.constant dense<0.000000e+00> : vector<48x32xf32>
    %233 = tpu.matmul %21, %232, %cst_119 {dimension_numbers = #tpu.dot_dimension_numbers<[1], [0], [0], [1], [0, 0, 1, 1], [], []>} : vector<48x16xbf16>, vector<16x32xbf16>, vector<48x32xf32> -> vector<48x32xf32>
    %234 = arith.addf %233, %11 : vector<48x32xf32>
    %cst_120 = arith.constant 0.000000e+00 : f32
    %235 = vector.broadcast %cst_120 : f32 to vector<48x32xf32>
    %236 = arith.maximumf %234, %235 : vector<48x32xf32>
    %cst_121 = arith.constant 1.000000e-07 : f32
    %237 = vector.broadcast %cst_121 : f32 to vector<48x32xf32>
    %238 = arith.addf %236, %237 : vector<48x32xf32>
    %239 = arith.truncf %238 : vector<48x32xf32> to vector<48x32xbf16>
    %cst_122 = arith.constant dense<0.000000e+00> : vector<16x32xf32>
    %240 = tpu.matmul %27, %239, %cst_122 {dimension_numbers = #tpu.dot_dimension_numbers<[1], [0], [0], [1], [0, 0, 1, 1], [], []>} : vector<16x48xbf16>, vector<48x32xbf16>, vector<16x32xf32> -> vector<16x32xf32>
    %241 = vector.broadcast %37 : vector<16x1xf32> to vector<16x32xf32>
    %242 = arith.mulf %240, %241 : vector<16x32xf32>
    %243 = arith.addf %242, %231 : vector<16x32xf32>
    %c2_123 = arith.constant 2 : index
    %c0_124 = arith.constant 0 : index
    %c0_125 = arith.constant 0 : index
    %244 = vector.load %arg11[%c2_123, %c0_124, %c0_125] : memref<3x32x64xf32, #tpu.memory_space<vmem>>, vector<1x32x64xf32>
    %245 = vector.shape_cast %244 : vector<1x32x64xf32> to vector<32x64xf32>
    %cst_126 = arith.constant dense<0.000000e+00> : vector<16x64xf32>
    %246 = tpu.matmul %243, %245, %cst_126 {dimension_numbers = #tpu.dot_dimension_numbers<[1], [0], [0], [1], [0, 0, 1, 1], [], []>} : vector<16x32xf32>, vector<32x64xf32>, vector<16x64xf32> -> vector<16x64xf32>
    %c2_127 = arith.constant 2 : index
    %c0_128 = arith.constant 0 : index
    %c0_129 = arith.constant 0 : index
    %247 = vector.load %arg12[%c2_127, %c0_128, %c0_129] : memref<3x1x64xf32, #tpu.memory_space<vmem>>, vector<1x1x64xf32>
    %248 = vector.shape_cast %247 : vector<1x1x64xf32> to vector<1x64xf32>
    %249 = vector.broadcast %248 : vector<1x64xf32> to vector<16x64xf32>
    %250 = arith.addf %246, %249 : vector<16x64xf32>
    %c2_130 = arith.constant 2 : index
    %c0_131 = arith.constant 0 : index
    %c0_132 = arith.constant 0 : index
    %251 = vector.load %arg13[%c2_130, %c0_131, %c0_132] : memref<3x1x64xf32, #tpu.memory_space<vmem>>, vector<1x1x64xf32>
    %252 = vector.shape_cast %251 : vector<1x1x64xf32> to vector<1x64xf32>
    %c2_133 = arith.constant 2 : index
    %c0_134 = arith.constant 0 : index
    %c0_135 = arith.constant 0 : index
    %253 = vector.load %arg14[%c2_133, %c0_134, %c0_135] : memref<3x1x64xf32, #tpu.memory_space<vmem>>, vector<1x1x64xf32>
    %254 = vector.shape_cast %253 : vector<1x1x64xf32> to vector<1x64xf32>
    %cst_136 = arith.constant dense<0.000000e+00> : vector<16xf32>
    %255 = vector.multi_reduction <add>, %250, %cst_136 [1] : vector<16x64xf32> to vector<16xf32>
    %256 = vector.shape_cast %255 : vector<16xf32> to vector<16x1xf32>
    %cst_137 = arith.constant 6.400000e+01 : f32
    %257 = vector.broadcast %cst_137 : f32 to vector<16x1xf32>
    %258 = arith.divf %256, %257 : vector<16x1xf32>
    %259 = vector.broadcast %258 : vector<16x1xf32> to vector<16x64xf32>
    %260 = arith.subf %250, %259 : vector<16x64xf32>
    %261 = arith.mulf %260, %260 : vector<16x64xf32>
    %cst_138 = arith.constant dense<0.000000e+00> : vector<16xf32>
    %262 = vector.multi_reduction <add>, %261, %cst_138 [1] : vector<16x64xf32> to vector<16xf32>
    %263 = vector.shape_cast %262 : vector<16xf32> to vector<16x1xf32>
    %cst_139 = arith.constant 6.400000e+01 : f32
    %264 = vector.broadcast %cst_139 : f32 to vector<16x1xf32>
    %265 = arith.divf %263, %264 : vector<16x1xf32>
    %266 = vector.broadcast %258 : vector<16x1xf32> to vector<16x64xf32>
    %267 = arith.subf %250, %266 : vector<16x64xf32>
    %cst_140 = arith.constant 9.99999974E-6 : f32
    %268 = vector.broadcast %cst_140 : f32 to vector<16x1xf32>
    %269 = arith.addf %265, %268 : vector<16x1xf32>
    %270 = math.rsqrt %269 : vector<16x1xf32>
    %271 = vector.broadcast %270 : vector<16x1xf32> to vector<16x64xf32>
    %272 = arith.mulf %267, %271 : vector<16x64xf32>
    %273 = vector.broadcast %252 : vector<1x64xf32> to vector<16x64xf32>
    %274 = arith.mulf %272, %273 : vector<16x64xf32>
    %275 = vector.broadcast %254 : vector<1x64xf32> to vector<16x64xf32>
    %276 = arith.addf %274, %275 : vector<16x64xf32>
    %cst_141 = arith.constant 0.000000e+00 : f32
    %277 = vector.broadcast %cst_141 : f32 to vector<16x64xf32>
    %278 = arith.maximumf %276, %277 : vector<16x64xf32>
    %c2_142 = arith.constant 2 : index
    %c0_143 = arith.constant 0 : index
    %c0_144 = arith.constant 0 : index
    %279 = vector.load %arg15[%c2_142, %c0_143, %c0_144] : memref<3x64x32xf32, #tpu.memory_space<vmem>>, vector<1x64x32xf32>
    %280 = vector.shape_cast %279 : vector<1x64x32xf32> to vector<64x32xf32>
    %cst_145 = arith.constant dense<0.000000e+00> : vector<16x32xf32>
    %281 = tpu.matmul %278, %280, %cst_145 {dimension_numbers = #tpu.dot_dimension_numbers<[1], [0], [0], [1], [0, 0, 1, 1], [], []>} : vector<16x64xf32>, vector<64x32xf32>, vector<16x32xf32> -> vector<16x32xf32>
    %c2_146 = arith.constant 2 : index
    %c0_147 = arith.constant 0 : index
    %c0_148 = arith.constant 0 : index
    %282 = vector.load %arg16[%c2_146, %c0_147, %c0_148] : memref<3x1x32xf32, #tpu.memory_space<vmem>>, vector<1x1x32xf32>
    %283 = vector.shape_cast %282 : vector<1x1x32xf32> to vector<1x32xf32>
    %284 = vector.broadcast %283 : vector<1x32xf32> to vector<16x32xf32>
    %285 = arith.addf %281, %284 : vector<16x32xf32>
    %286 = arith.addf %285, %203 : vector<16x32xf32>
    %c0_149 = arith.constant 0 : index
    %c0_150 = arith.constant 0 : index
    %287 = vector.load %arg17[%c0_149, %c0_150] : memref<1x32xf32, #tpu.memory_space<vmem>>, vector<1x32xf32>
    %c0_151 = arith.constant 0 : index
    %c0_152 = arith.constant 0 : index
    %288 = vector.load %arg18[%c0_151, %c0_152] : memref<1x32xf32, #tpu.memory_space<vmem>>, vector<1x32xf32>
    %cst_153 = arith.constant dense<0.000000e+00> : vector<16xf32>
    %289 = vector.multi_reduction <add>, %286, %cst_153 [1] : vector<16x32xf32> to vector<16xf32>
    %290 = vector.shape_cast %289 : vector<16xf32> to vector<16x1xf32>
    %cst_154 = arith.constant 3.200000e+01 : f32
    %291 = vector.broadcast %cst_154 : f32 to vector<16x1xf32>
    %292 = arith.divf %290, %291 : vector<16x1xf32>
    %293 = vector.broadcast %292 : vector<16x1xf32> to vector<16x32xf32>
    %294 = arith.subf %286, %293 : vector<16x32xf32>
    %295 = arith.mulf %294, %294 : vector<16x32xf32>
    %cst_155 = arith.constant dense<0.000000e+00> : vector<16xf32>
    %296 = vector.multi_reduction <add>, %295, %cst_155 [1] : vector<16x32xf32> to vector<16xf32>
    %297 = vector.shape_cast %296 : vector<16xf32> to vector<16x1xf32>
    %cst_156 = arith.constant 3.200000e+01 : f32
    %298 = vector.broadcast %cst_156 : f32 to vector<16x1xf32>
    %299 = arith.divf %297, %298 : vector<16x1xf32>
    %300 = vector.broadcast %292 : vector<16x1xf32> to vector<16x32xf32>
    %301 = arith.subf %286, %300 : vector<16x32xf32>
    %cst_157 = arith.constant 9.99999974E-6 : f32
    %302 = vector.broadcast %cst_157 : f32 to vector<16x1xf32>
    %303 = arith.addf %299, %302 : vector<16x1xf32>
    %304 = math.rsqrt %303 : vector<16x1xf32>
    %305 = vector.broadcast %304 : vector<16x1xf32> to vector<16x32xf32>
    %306 = arith.mulf %301, %305 : vector<16x32xf32>
    %307 = vector.broadcast %287 : vector<1x32xf32> to vector<16x32xf32>
    %308 = arith.mulf %306, %307 : vector<16x32xf32>
    %309 = vector.broadcast %288 : vector<1x32xf32> to vector<16x32xf32>
    %310 = arith.addf %308, %309 : vector<16x32xf32>
    %cst_158 = arith.constant 0.000000e+00 : f32
    %311 = vector.broadcast %cst_158 : f32 to vector<16x32xf32>
    %312 = arith.maximumf %310, %311 : vector<16x32xf32>
    %c0_159 = arith.constant 0 : index
    %c0_160 = arith.constant 0 : index
    %313 = vector.load %arg19[%c0_159, %c0_160] : memref<32x4xf32, #tpu.memory_space<vmem>>, vector<32x4xf32>
    %cst_161 = arith.constant dense<0.000000e+00> : vector<16x4xf32>
    %314 = tpu.matmul %312, %313, %cst_161 {dimension_numbers = #tpu.dot_dimension_numbers<[1], [0], [0], [1], [0, 0, 1, 1], [], []>} : vector<16x32xf32>, vector<32x4xf32>, vector<16x4xf32> -> vector<16x4xf32>
    %c0_162 = arith.constant 0 : index
    %c0_163 = arith.constant 0 : index
    %315 = vector.load %arg20[%c0_162, %c0_163] : memref<1x4xf32, #tpu.memory_space<vmem>>, vector<1x4xf32>
    %316 = vector.broadcast %315 : vector<1x4xf32> to vector<16x4xf32>
    %317 = arith.addf %314, %316 : vector<16x4xf32>
    %c0_164 = arith.constant 0 : index
    %c0_165 = arith.constant 0 : index
    %318 = vector.load %arg21[%c0_164, %c0_165] : memref<16x4xf32, #tpu.memory_space<vmem>>, vector<16x4xf32>
    tpu.vector_store %arg21[%c0_164, %c0_165], %317 {strides = array<i32>} : memref<16x4xf32, #tpu.memory_space<vmem>>, vector<16x4xf32>,
    return
  }
  func.func @transform_0(%arg0: i32) -> (i32, i32) {
    %c0_i32 = arith.constant 0 : i32
    %c0_i32_0 = arith.constant 0 : i32
    %c0_i32_1 = arith.constant 0 : i32
    return %c0_i32, %c0_i32_0 : i32, i32
  }
  func.func @transform_1(%arg0: i32) -> (i32, i32) {
    %c0_i32 = arith.constant 0 : i32
    %c0_i32_0 = arith.constant 0 : i32
    %c0_i32_1 = arith.constant 0 : i32
    return %c0_i32, %c0_i32_0 : i32, i32
  }
  func.func @transform_2(%arg0: i32) -> (i32, i32) {
    %c0_i32 = arith.constant 0 : i32
    %c0_i32_0 = arith.constant 0 : i32
    %c0_i32_1 = arith.constant 0 : i32
    return %c0_i32, %c0_i32_0 : i32, i32
  }
  func.func @transform_3(%arg0: i32) -> (i32, i32) {
    %c0_i32 = arith.constant 0 : i32
    %c0_i32_0 = arith.constant 0 : i32
    %c0_i32_1 = arith.constant 0 : i32
    return %c0_i32, %c0_i32_0 : i32, i32
  }
  func.func @transform_4(%arg0: i32) -> (i32, i32) {
    %c0_i32 = arith.constant 0 : i32
    %c0_i32_0 = arith.constant 0 : i32
    %c0_i32_1 = arith.constant 0 : i32
    return %c0_i32, %c0_i32_0 : i32, i32
  }
  func.func @transform_5(%arg0: i32) -> (i32, i32) {
    %c0_i32 = arith.constant 0 : i32
    %c0_i32_0 = arith.constant 0 : i32
    %c0_i32_1 = arith.constant 0 : i32
    return %c0_i32, %c0_i32_0 : i32, i32
  }
  func.func @transform_6(%arg0: i32) -> (i32, i32) {
    %c0_i32 = arith.constant 0 : i32
    %c0_i32_0 = arith.constant 0 : i32
    %c0_i32_1 = arith.constant 0 : i32
    return %c0_i32, %c0_i32_0 : i32, i32
  }
  func.func @transform_7(%arg0: i32) -> (i32, i32) {
    %c0_i32 = arith.constant 0 : i32
    %c0_i32_0 = arith.constant 0 : i32
    %c0_i32_1 = arith.constant 0 : i32
    return %c0_i32, %c0_i32_0 : i32, i32
  }
  func.func @transform_8(%arg0: i32) -> (i32, i32, i32) {
    %c0_i32 = arith.constant 0 : i32
    %c0_i32_0 = arith.constant 0 : i32
    %c0_i32_1 = arith.constant 0 : i32
    %c0_i32_2 = arith.constant 0 : i32
    return %c0_i32, %c0_i32_0, %c0_i32_1 : i32, i32, i32
  }
  func.func @transform_9(%arg0: i32) -> (i32, i32, i32) {
    %c0_i32 = arith.constant 0 : i32
    %c0_i32_0 = arith.constant 0 : i32
    %c0_i32_1 = arith.constant 0 : i32
    %c0_i32_2 = arith.constant 0 : i32
    return %c0_i32, %c0_i32_0, %c0_i32_1 : i32, i32, i32
  }
  func.func @transform_10(%arg0: i32) -> (i32, i32, i32) {
    %c0_i32 = arith.constant 0 : i32
    %c0_i32_0 = arith.constant 0 : i32
    %c0_i32_1 = arith.constant 0 : i32
    %c0_i32_2 = arith.constant 0 : i32
    return %c0_i32, %c0_i32_0, %c0_i32_1 : i32, i32, i32
  }
  func.func @transform_11(%arg0: i32) -> (i32, i32, i32) {
    %c0_i32 = arith.constant 0 : i32
    %c0_i32_0 = arith.constant 0 : i32
    %c0_i32_1 = arith.constant 0 : i32
    %c0_i32_2 = arith.constant 0 : i32
    return %c0_i32, %c0_i32_0, %c0_i32_1 : i32, i32, i32
  }
  func.func @transform_12(%arg0: i32) -> (i32, i32, i32) {
    %c0_i32 = arith.constant 0 : i32
    %c0_i32_0 = arith.constant 0 : i32
    %c0_i32_1 = arith.constant 0 : i32
    %c0_i32_2 = arith.constant 0 : i32
    return %c0_i32, %c0_i32_0, %c0_i32_1 : i32, i32, i32
  }
  func.func @transform_13(%arg0: i32) -> (i32, i32, i32) {
    %c0_i32 = arith.constant 0 : i32
    %c0_i32_0 = arith.constant 0 : i32
    %c0_i32_1 = arith.constant 0 : i32
    %c0_i32_2 = arith.constant 0 : i32
    return %c0_i32, %c0_i32_0, %c0_i32_1 : i32, i32, i32
  }
  func.func @transform_14(%arg0: i32) -> (i32, i32, i32) {
    %c0_i32 = arith.constant 0 : i32
    %c0_i32_0 = arith.constant 0 : i32
    %c0_i32_1 = arith.constant 0 : i32
    %c0_i32_2 = arith.constant 0 : i32
    return %c0_i32, %c0_i32_0, %c0_i32_1 : i32, i32, i32
  }
  func.func @transform_15(%arg0: i32) -> (i32, i32, i32) {
    %c0_i32 = arith.constant 0 : i32
    %c0_i32_0 = arith.constant 0 : i32
    %c0_i32_1 = arith.constant 0 : i32
    %c0_i32_2 = arith.constant 0 : i32
    return %c0_i32, %c0_i32_0, %c0_i32_1 : i32, i32, i32
  }
  func.func @transform_16(%arg0: i32) -> (i32, i32) {
    %c0_i32 = arith.constant 0 : i32
    %c0_i32_0 = arith.constant 0 : i32
    %c0_i32_1 = arith.constant 0 : i32
    return %c0_i32, %c0_i32_0 : i32, i32
  }
  func.func @transform_17(%arg0: i32) -> (i32, i32) {
    %c0_i32 = arith.constant 0 : i32
    %c0_i32_0 = arith.constant 0 : i32
    %c0_i32_1 = arith.constant 0 : i32
    return %c0_i32, %c0_i32_0 : i32, i32
  }
  func.func @transform_18(%arg0: i32) -> (i32, i32) {
    %c0_i32 = arith.constant 0 : i32
    %c0_i32_0 = arith.constant 0 : i32
    %c0_i32_1 = arith.constant 0 : i32
    return %c0_i32, %c0_i32_0 : i32, i32
  }
  func.func @transform_19(%arg0: i32) -> (i32, i32) {
    %c0_i32 = arith.constant 0 : i32
    %c0_i32_0 = arith.constant 0 : i32
    %c0_i32_1 = arith.constant 0 : i32
    return %c0_i32, %c0_i32_0 : i32, i32
  }
  func.func @transform_20(%arg0: i32) -> (i32, i32) {
    %c0_i32 = arith.constant 0 : i32
    %c0_i32_0 = arith.constant 0 : i32
    %c0_i32_1 = arith.constant 0 : i32
    return %c0_i32, %c0_i32_0 : i32, i32
  }
}

</mosaic_0001>

<bundles_post_ra>
// kernel: tpu_custom_call.1
= control target key start
LH: loop header
LB: loop body
LE: loop exit
PB: predicated region body
PF: predicated region fallthrough
CT: control target
= control target key end

     0   :  { %vm76_vm0 = vcmask 64512   ;;  %v2228_v3 = vmov 0   ;;  %vm363_vm1 = vcmask 261120   ;;  %v2229_v13 = vmov 0.0   ;;  %s2812_s4 = inlined_call_operand.vmem [shape: f32[8,32], index: 4, kind: input, shape index: {}]   ;;  %s2813_s0 = inlined_call_operand.vmem [shape: f32[16,8], index: 0, kind: input, shape index: {}]   ;;  %s2814_s2 = inlined_call_operand.vmem [shape: s32[48,1], index: 2, kind: input, shape index: {}]   ;;  %s2815_s5 = inlined_call_operand.vmem [shape: f32[1,32], index: 5, kind: input, shape index: {}]   ;;  %s2816_s6 = inlined_call_operand.vmem [shape: f32[6,32], index: 6, kind: input, shape index: {}]   ;;  %s2817_s1 = inlined_call_operand.vmem [shape: f32[48,6], index: 1, kind: input, shape index: {}]   ;;  %s2818_s8 = inlined_call_operand.vmem [shape: f32[3,1,32], index: 8, kind: input, shape index: {}]   ;;  %s2819_s9 = inlined_call_operand.vmem [shape: f32[3,1,32], index: 9, kind: input, shape index: {}]   ;;  %s2820_s3 = inlined_call_operand.vmem [shape: s32[1,48], index: 3, kind: input, shape index: {}]   ;;  %s2821_s7 = inlined_call_operand.vmem [shape: f32[1,32], index: 7, kind: input, shape index: {}]   ;;  %s2822_s10 = inlined_call_operand.vmem [shape: f32[3,32,64], index: 10, kind: input, shape index: {}]   ;;  %s2823_s11 = inlined_call_operand.vmem [shape: f32[3,1,64], index: 11, kind: input, shape index: {}]   ;;  %s2824_s14 = inlined_call_operand.vmem [shape: f32[3,64,32], index: 14, kind: input, shape index: {}]   ;;  %s2825_s12 = inlined_call_operand.vmem [shape: f32[3,1,64], index: 12, kind: input, shape index: {}]   ;;  %s2826_s13 = inlined_call_operand.vmem [shape: f32[3,1,64], index: 13, kind: input, shape index: {}]   ;;  %s2827_s15 = inlined_call_operand.vmem [shape: f32[3,1,32], index: 15, kind: input, shape index: {}]   ;;  %s2828_s18 = inlined_call_operand.vmem [shape: f32[32,4], index: 18, kind: input, shape index: {}]   ;;  %s2829_s16 = inlined_call_operand.vmem [shape: f32[1,32], index: 16, kind: input, shape index: {}]   ;;  %s2830_s17 = inlined_call_operand.vmem [shape: f32[1,32], index: 17, kind: input, shape index: {}]   ;;  %s2831_s19 = inlined_call_operand.vmem [shape: f32[1,4], index: 19, kind: input, shape index: {}]   ;;  %s2832_s20 = inlined_call_operand.vmem [shape: f32[16,4], index: 20, kind: output, shape index: {}]  }
   0x1   :  { %2835 = sst [smem:[#allocation2_spill]] %s2812_s4  ;;  %2195 = vset.pattern.permute.xlu1 %v2228_v3  ;;  %2194 = vset.pattern.permute.xlu0 %v2228_v3  ;;  %vm191_vm2 = vcmask 1045504   ;;  %vm172_vm3 = vcmask 48128   ;;  %v158_v29 = vld [vmem:[%s2817_s1] sm:$0xff]  ;;  %v159_v30 = vld [vmem:[%s2817_s1 + $0x8] sm:$0xff]  ;;  %vm2230_vm4 = vmmov 0   ;;  %v297_v45 = vlaneseq }
   0x2   :  { %2836 = sst [smem:[#allocation3_spill]] %s2813_s0  ;;  %s2840_s23 = sld [smem:[#allocation2_spill]]  ;;  %1929 = vmatprep.mubr.msk.f32.mxu1 %vm172_vm3, %v158_v29  ;;  %v160_v31 = vld [vmem:[%s2817_s1 + $0x10] sm:$0xff]  ;;  %v161_v32 = vld [vmem:[%s2817_s1 + $0x18] sm:$0xff]  ;;  %v162_v33 = vld [vmem:[%s2817_s1 + $0x20] sm:$0xff]  ;;  %vm410_vm7 = vcmask 130048  }
   0x3   :  { %2837 = sst [smem:[#allocation4_spill]] %s2814_s2  ;;  %s2841_s25 = sld [smem:[#allocation3_spill]]  ;;  %v163_v34 = vld [vmem:[%s2817_s1 + $0x28] sm:$0xff]  ;;  %v1751_v43 = vld [vmem:[%s2818_s8] ss:$0 sm:$0xff]  ;;  %v298_v51 = vand.u32 127, %v297_v45 }
   0x4   :  { %2838 = sst [smem:[#allocation5_spill]] %s2815_s5  ;;  %v1752_v48 = vld [vmem:[%s2819_s9] ss:$0 sm:$0xff]  ;;  %vm344_vm14 = vcmask 392192  }
   0x5   :  { %2839 = sst [smem:[#allocation6_spill]] %s2816_s6  ;;  %s2842_s6 = sld [smem:[#allocation4_spill]] }
   0x6   :  { %s2843_s4 = sld [smem:[#allocation5_spill]]  ;;  %s2844_s30 = sld [smem:[#allocation6_spill]] }
   0x8   :  { %v68_v0 = vld [vmem:[%s2840_s23] sm:$0xff] }
   0x9   :  { %v66_v1 = vld [vmem:[%s2841_s25] sm:$0xff]  ;;  %v67_v2 = vld [vmem:[%s2841_s25 + $0x8] sm:$0xff]  ;;  %1922 = vmatprep.subr.mxu0 %v68_v0 }
   0xa   :  { %1924 = vmatprep.mubr.msk.f32.mxu0 %vm76_vm0, %v66_v1  ;;  %1923 = vmatpush3.msra.mxu0 %v68_v0 }
   0xb   :  { %1925 = vmatmul.mubr.msk.f32.vlgmr.msra.gmra.mrb[0].mxu0 %vm76_vm0, %v67_v2  ;;  %v291_v4 = vld [vmem:[%s2842_s6 + $0x8] sm:$0xff]  ;;  %v290_v12 = vld [vmem:[%s2842_s6] sm:$0xff]  ;;  %1938 = vmatprep.subr.bf16.mxu0 %v2229_v13  ;;  %v292_v24 = vld [vmem:[%s2842_s6 + $0x10] sm:$0xff] }
   0xc   :  { %306 = vperm.xlu1 %2195, %v291_v4   ;;  %v1739_v5 = vld [vmem:[%s2843_s4] ss:$0 sm:$0xff]  ;;  %v293_v25 = vld [vmem:[%s2842_s6 + $0x18] sm:$0xff]  ;;  %v295_v27 = vld [vmem:[%s2842_s6 + $0x28] sm:$0xff]  ;;  %1940 = vmatprep.mubr.msk.bf16.mxu0 %vm2230_vm4, %v2229_v13 }
   0xd   :  { %v294_v26 = vld [vmem:[%s2842_s6 + $0x20] sm:$0xff] }
   0xe   :  { %v164_v28 = vld [vmem:[%s2844_s30] sm:$0x3f] }
   0xf   :  { %1927 = vmatprep.subr.msk.mxu1 %vm191_vm2, %v164_v28 }
  0x10   :  { %1928 = vmatpush3.msk.msra.mxu1 %vm191_vm2, %v164_v28  ;;  %vm634_vm2 = vcmask 523264  }
  0x11   :  { %1930 = vmatmul.mubr.msk.f32.vlgmr.msra.gmra.mrb[0].mxu1 %vm172_vm3, %v159_v30  ;;  %1952 = vmatprep.subr.bf16.mxu1 %v2229_v13 }
  0x12   :  { %1932 = vmatprep.mubr.msk.f32.mxu1 %vm172_vm3, %v160_v31 }
  0x15   :  { %1933 = vmatmul.mubr.msk.f32.gmra.mrb[2].mxu1 %vm172_vm3, %v161_v32 }
  0x16   :  { %1935 = vmatprep.mubr.msk.f32.mxu1 %vm172_vm3, %v162_v33 }
  0x19   :  { %1936 = vmatmul.mubr.msk.f32.gmra.mrb[4].mxu1 %vm172_vm3, %v163_v34  ;;  %vm1732_vm3 = vcmask 31744  }
  0x1a   :  { %1958 = vmatprep.mubr.msk.bf16.mxu1 %vm2230_vm4, %v2229_v13 }
  0x8b   :  { %v307_v35 = vpop.permute.xlu1 %306 }
  0x8c   :  { %vm321_vm5 = vcmp.eq.s32.totalorder %v298_v51, %v307_v35 }
  0x8d   :  { %v327_v59 = vsel %vm321_vm5, 1.0, %v2229_v13 }
  0xde   :  { %v1926_v6 = vpop.f32.mrb[0].mxu0 }
  0xdf   :  { %v149_v7 = vpop.f32.mrb[1].mxu0  ;;  %v2353_v9 = vadd.f32 %v1926_v6, %v1739_v5 }
  0xe0   :  { %v2351_v8 = vadd.f32 %v1739_v5, %v149_v7 }
  0xe1   :  { %v367_v11 = vsel %vm363_vm1, %v2353_v9, 0.0 }
  0xe2   :  { %v364_v10 = vsel %vm363_vm1, %v2351_v8, 0.0 }
  0xe3   :  { %365 = vadd.xlane.f32.xlu0 %v364_v10 }
  0xe4   :  { %v1931_v7 = vpop.f32.mrb[0].mxu1 }
  0xe5   :  { %v261_v10 = vpop.f32.mrb[1].mxu1 }
  0xe7   :  { %368 = vadd.xlane.f32.xlu0 %v367_v11 }
  0xe8   :  { %v1934_v11 = vpop.f32.mrb[2].mxu1 }
  0xfd   :  { %303 = vperm.xlu0 %2194, %v290_v12   ;;  %v271_v12 = vpop.f32.mrb[3].mxu1 }
 0x170   :  { %v366_v14 = vpop.xlane.xlu0 %365 }
 0x171   :  { %v371_v15 = vmul.f32 0.03125, %v366_v14  ;;  %v1937_v14 = vpop.f32.mrb[4].mxu1 }
 0x173   :  { %v373_v18 = vsub.f32 %v2351_v8, %v371_v15  ;;  %v281_v15 = vpop.f32.mrb[5].mxu1 }
 0x174   :  { %v369_v16 = vpop.xlane.xlu0 %368 }
 0x175   :  { %v372_v17 = vmul.f32 0.03125, %v369_v16  ;;  %v375_v22 = vmul.f32 %v373_v18, %v373_v18  ;;  %v300_v16 = vshrl.u32 %v297_v45, 7 }
 0x177   :  { %v374_v19 = vsub.f32 %v2353_v9, %v372_v17  ;;  %v377_v23 = vsel %vm363_vm1, %v375_v22, 0.0  ;;  %v301_v17 = vadd.s32 8, %v300_v16 }
 0x179   :  { %v376_v20 = vmul.f32 %v374_v19, %v374_v19 }
 0x17b   :  { %v380_v21 = vsel %vm363_vm1, %v376_v20, 0.0 }
 0x17c   :  { %381 = vadd.xlane.f32.xlu1 %v380_v21  ;;  %v304_v52 = vpop.permute.xlu0 %303 }
 0x17d   :  { %vm320_vm6 = vcmp.eq.s32.totalorder %v298_v51, %v304_v52 }
 0x17e   :  { %v326_v60 = vsel %vm320_vm6, 1.0, %v2229_v13 }
 0x17f   :  { %v2429_v62 = vpack.c.bf16 %v327_v59, %v326_v60 }
 0x180   :  { %378 = vadd.xlane.f32.xlu1 %v377_v23 }
 0x191   :  { %309 = vperm.xlu1 %2195, %v292_v24   ;;  %v1742_v24 = vld [vmem:[%s2821_s7] ss:$0 sm:$0xff] }
 0x192   :  { %v2467_v35 = vadd.f32 %v1742_v24, %v271_v12  ;;  %v542_v12 = vld [vmem:[%s2822_s10 + $0x10] sm:$0xff] }
 0x195   :  { %312 = vperm.xlu1 %2195, %v293_v25   ;;  %v2461_v25 = vadd.f32 %v1742_v24, %v261_v10 }
 0x199   :  { %315 = vperm.xlu1 %2195, %v294_v26   ;;  %v2463_v26 = vadd.f32 %v1931_v7, %v1742_v24 }
 0x19d   :  { %318 = vperm.xlu1 %2195, %v295_v27  }
 0x209   :  { %v382_v36 = vpop.xlane.xlu1 %381 }
 0x20a   :  { %v384_v37 = vmul.f32 0.03125, %v382_v36 }
 0x20c   :  { %v386_v38 = vadd.f32 1e-05, %v384_v37 }
 0x20d   :  { %v379_v39 = vpop.xlane.xlu1 %378 }
 0x20e   :  { %2196 = vrsqrt.f32 %v386_v38  ;;  %v383_v40 = vmul.f32 0.03125, %v379_v39  ;;  %v2469_v38 = vadd.f32 %v1934_v11, %v1742_v24 }
 0x210   :  { %v385_v41 = vadd.f32 1e-05, %v383_v40 }
 0x211   :  { %v310_v50 = vpop.permute.xlu1 %309 }
 0x212   :  { %2198 = vrsqrt.f32 %v385_v41  ;;  %vm322_vm9 = vcmp.eq.s32.totalorder %v298_v51, %v310_v50 }
 0x213   :  { %v328_v1 = vsel %vm322_vm9, 1.0, %v2229_v13 }
 0x215   :  { %v313_v56 = vpop.permute.xlu1 %312 }
 0x216   :  { %vm323_vm8 = vcmp.eq.s32.totalorder %v298_v51, %v313_v56 }
 0x217   :  { %v329_v0 = vsel %vm323_vm8, 1.0, %v2229_v13 }
 0x218   :  { %v2197_v42 = vpop.eup %2196  ;;  %v2437_v3 = vpack.c.bf16 %v329_v0, %v328_v1 }
 0x219   :  { %v390_v44 = vmul.f32 %v2197_v42, %v374_v19  ;;  %v316_v63 = vpop.permute.xlu1 %315 }
 0x21a   :  { %vm324_vm11 = vcmp.eq.s32.totalorder %v298_v51, %v316_v63 }
 0x21b   :  { %v398_v46 = vmul.f32 %v1751_v43, %v390_v44  ;;  %v330_v5 = vsel %vm324_vm11, 1.0, %v2229_v13 }
 0x21c   :  { %v2199_v47 = vpop.eup %2198 }
 0x21d   :  { %v389_v49 = vmul.f32 %v2199_v47, %v373_v18  ;;  %v2417_v54 = vadd.f32 %v1752_v48, %v398_v46  ;;  %v319_v2 = vpop.permute.xlu1 %318  ;;  %v1750_v18 = vld [vmem:[%s2820_s3] ss:$0 sm:$0xff] }
 0x21e   :  { %vm325_vm10 = vcmp.eq.s32.totalorder %v298_v51, %v319_v2  ;;  %vm339_vm12 = vcmp.eq.s32.totalorder %v300_v16, %v1750_v18  ;;  %vm340_vm13 = vcmp.eq.s32.totalorder %v301_v17, %v1750_v18  ;;  %v2476_v51 = vadd.f32 %v1937_v14, %v1742_v24  ;;  %v540_v2 = vld [vmem:[%s2822_s10] sm:$0xff]  ;;  %v543_v14 = vld [vmem:[%s2822_s10 + $0x18] sm:$0xff] }
 0x21f   :  { %v397_v53 = vmul.f32 %v1751_v43, %v389_v49  ;;  %v408_v58 = vmax.f32 %v2417_v54, 0.0  ;;  %v331_v4 = vsel %vm325_vm10, 1.0, %v2229_v13  ;;  %v341_v19 = vsel %vm339_vm12, 1.0, %v2229_v13 }
 0x220   :  { %v2445_v6 = vpack.c.bf16 %v331_v4, %v330_v5  ;;  %v342_v20 = vsel %vm340_vm13, 1.0, %v2229_v13  ;;  %v345_v22 = vsel %vm344_vm14, %v341_v19, 0.0  ;;  %v541_v4 = vld [vmem:[%s2822_s10 + $0x8] sm:$0xff] }
 0x221   :  { %v2419_v55 = vadd.f32 %v1752_v48, %v397_v53  ;;  %v2454_v21 = vpack.c.bf16 %v342_v20, %v341_v19  ;;  %v348_v23 = vsel %vm344_vm14, %v342_v20, 0.0  ;;  %346 = vadd.xlane.f32.xlu1 %v345_v22  ;;  %v2474_v48 = vadd.f32 %v1742_v24, %v281_v15 }
 0x222   :  { %349 = vadd.xlane.f32.xlu0 %v348_v23  ;;  %v2111_v10 = vpack.c.bf16 %v541_v4, %v540_v2  ;;  %v2115_v15 = vpack.c.bf16 %v543_v14, %v542_v12  ;;  %v686_v2 = vld [vmem:[%s2824_s14 + $0x30] sm:$0xff]  ;;  %v687_v4 = vld [vmem:[%s2824_s14 + $0x38] sm:$0xff] }
 0x223   :  { %v407_v57 = vmax.f32 %v2419_v55, 0.0 }
 0x225   :  { %v409_v61 = vpack.c.bf16 %v408_v58, %v407_v57 }
 0x227   :  { %1939 = vmatpush3.bf16.msra.mxu0 %v409_v61 }
 0x22a   :  { %1941 = vmatmul.mubr.msk.bf16.vlgmr.msra.gmra.mrb[4].mxu0 %vm410_vm7, %v2429_v62 }
 0x22b   :  { %1944 = vmatprep.mubr.msk.bf16.mxu0 %vm2230_vm4, %v2229_v13 }
 0x232   :  { %1945 = vmatmul.mubr.msk.bf16.gmra.mrb[8].mxu0 %vm410_vm7, %v2437_v3 }
 0x233   :  { %1948 = vmatprep.mubr.msk.bf16.mxu0 %vm2230_vm4, %v2229_v13 }
 0x23a   :  { %1949 = vmatmul.mubr.msk.bf16.gmra.mrb[12].mxu0 %vm410_vm7, %v2445_v6 }
 0x2ae   :  { %v347_v16 = vpop.xlane.xlu1 %346 }
 0x2af   :  { %v350_v17 = vpop.xlane.xlu0 %349  ;;  %v353_v18 = vmax.f32 %v347_v16, 1.0  ;;  %vm351_vm15 = vcmp.gt.f32.partialorder %v347_v16, 0.0 }
 0x2b0   :  { %v354_v19 = vmax.f32 %v350_v17, 1.0  ;;  %vm352_vm0 = vcmp.gt.f32.partialorder %v350_v17, 0.0  ;;  %v1760_v17 = vld [vmem:[%s2825_s12] ss:$0 sm:$0xff] }
 0x2b1   :  { %2200 = vrcp.f32 %v353_v18 }
 0x2b2   :  { %2202 = vrcp.f32 %v354_v19  ;;  %v1761_v19 = vld [vmem:[%s2826_s13] ss:$0 sm:$0xff] }
 0x2bb   :  { %v2201_v20 = vpop.eup %2200 }
 0x2bc   :  { %v2203_v22 = vpop.eup %2202  ;;  %v2496_v23 = vsel %vm351_vm15, %v2201_v20, 0.0 }
 0x2fd   :  { %v454_v27 = vpop.f32.mrb[4].mxu0 }
 0x2fe   :  { %v455_v28 = vadd.f32 %v454_v27, %v2461_v25  ;;  %v1942_v29 = vpop.f32.mrb[5].mxu0 }
 0x2ff   :  { %v457_v30 = vpop.f32.mrb[6].mxu0  ;;  %v2499_v29 = vsel %vm352_vm0, %v2203_v22, 0.0 }
 0x300   :  { %v477_v31 = vmax.f32 %v455_v28, 0.0  ;;  %v458_v32 = vadd.f32 %v457_v30, %v2463_v26  ;;  %v1943_v33 = vpop.f32.mrb[7].mxu0 }
 0x302   :  { %v478_v34 = vmax.f32 %v458_v32, 0.0  ;;  %v483_v36 = vadd.f32 1e-07, %v477_v31 }
 0x304   :  { %v484_v37 = vadd.f32 1e-07, %v478_v34 }
 0x305   :  { %v462_v39 = vpop.f32.mrb[8].mxu0 }
 0x306   :  { %v489_v40 = vpack.c.bf16 %v484_v37, %v483_v36  ;;  %v463_v41 = vadd.f32 %v462_v39, %v2467_v35  ;;  %v1946_v42 = vpop.f32.mrb[9].mxu0  ;;  %v1757_v36 = vld [vmem:[%s2823_s11] ss:$0 sm:$0xff] }
 0x307   :  { %v465_v43 = vpop.f32.mrb[10].mxu0 }
 0x308   :  { %v479_v44 = vmax.f32 %v463_v41, 0.0  ;;  %v466_v45 = vadd.f32 %v465_v43, %v2469_v38  ;;  %v1947_v46 = vpop.f32.mrb[11].mxu0  ;;  %1953 = vmatpush3.bf16.msra.mxu1 %v489_v40 }
 0x309   :  { %1954 = vmatprep.subr.bf16.mxu1 %v2229_v13 }
 0x30a   :  { %v480_v47 = vmax.f32 %v466_v45, 0.0  ;;  %v485_v49 = vadd.f32 1e-07, %v479_v44 }
 0x30c   :  { %v486_v50 = vadd.f32 1e-07, %v480_v47 }
 0x30d   :  { %v470_v52 = vpop.f32.mrb[12].mxu0 }
 0x30e   :  { %v490_v53 = vpack.c.bf16 %v486_v50, %v485_v49  ;;  %v471_v56 = vadd.f32 %v470_v52, %v2474_v48  ;;  %v1950_v59 = vpop.f32.mrb[13].mxu0  ;;  %v680_v52 = vld [vmem:[%s2824_s14] sm:$0xff] }
 0x30f   :  { %v473_v60 = vpop.f32.mrb[14].mxu0  ;;  %v682_v59 = vld [vmem:[%s2824_s14 + $0x10] sm:$0xff] }
 0x310   :  { %v481_v61 = vmax.f32 %v471_v56, 0.0  ;;  %v474_v63 = vadd.f32 %v473_v60, %v2476_v51  ;;  %v1951_v0 = vpop.f32.mrb[15].mxu0  ;;  %1955 = vmatpush3.bf16.msra.mxu1 %v490_v53  ;;  %v681_v53 = vld [vmem:[%s2824_s14 + $0x8] sm:$0xff]  ;;  %v683_v60 = vld [vmem:[%s2824_s14 + $0x18] sm:$0xff] }
 0x311   :  { %1956 = vmatprep.subr.bf16.mxu1 %v2229_v13  ;;  %v2119_v56 = vpack.c.bf16 %v681_v53, %v680_v52  ;;  %v685_v0 = vld [vmem:[%s2824_s14 + $0x28] sm:$0xff] }
 0x312   :  { %v482_v1 = vmax.f32 %v474_v63, 0.0  ;;  %v487_v5 = vadd.f32 1e-07, %v481_v61  ;;  %v2123_v61 = vpack.c.bf16 %v683_v60, %v682_v59  ;;  %v684_v63 = vld [vmem:[%s2824_s14 + $0x20] sm:$0xff] }
 0x313   :  { %2120 = vmatprep.subr.bf16.mxu0 %v2119_v56 }
 0x314   :  { %v488_v7 = vadd.f32 1e-07, %v482_v1  ;;  %2122 = vmatpush3.bf16.msra.mxu0 %v2119_v56  ;;  %v2127_v1 = vpack.c.bf16 %v685_v0, %v684_v63 }
 0x315   :  { %2124 = vmatprep.subr.bf16.mxu0 %v2123_v61 }
 0x316   :  { %v491_v11 = vpack.c.bf16 %v488_v7, %v487_v5  ;;  %v2131_v5 = vpack.c.bf16 %v687_v4, %v686_v2  ;;  %v1768_v2 = vld [vmem:[%s2819_s9 + $0x1] ss:$0 sm:$0xff] }
 0x318   :  { %1957 = vmatpush3.bf16.msra.mxu1 %v491_v11  ;;  %2126 = vmatpush3.bf16.msra.mxu0 %v2123_v61  ;;  %v1767_v61 = vld [vmem:[%s2818_s8 + $0x1] ss:$0 sm:$0xff] }
 0x319   :  { %2112 = vmatprep.subr.bf16.mxu1 %v2111_v10  ;;  %2128 = vmatprep.subr.bf16.mxu0 %v2127_v1 }
 0x31b   :  { %1959 = vmatmul.mubr.msk.bf16.vlgmr.msra.gmra.mrb[8].mxu1 %vm344_vm14, %v2454_v21 }
 0x31c   :  { %2114 = vmatpush3.bf16.msra.mxu1 %v2111_v10  ;;  %2130 = vmatpush3.bf16.msra.mxu0 %v2127_v1 }
 0x31d   :  { %2116 = vmatprep.subr.bf16.mxu1 %v2115_v15  ;;  %2132 = vmatprep.subr.bf16.mxu0 %v2131_v5 }
 0x320   :  { %2118 = vmatpush3.bf16.msra.mxu1 %v2115_v15  ;;  %2134 = vmatpush3.bf16.msra.mxu0 %v2131_v5 }
 0x321   :  { %1992 = vmatprep.subr.bf16.mxu1 %v2229_v13  ;;  %2006 = vmatprep.subr.bf16.mxu0 %v2229_v13 }
 0x3ee   :  { %v529_v24 = vpop.f32.mrb[8].mxu1 }
 0x3ef   :  { %v536_v27 = vmul.f32 %v529_v24, %v2496_v23  ;;  %v1960_v28 = vpop.f32.mrb[9].mxu1 }
 0x3f0   :  { %v532_v30 = vpop.f32.mrb[10].mxu1 }
 0x3f1   :  { %v538_v31 = vadd.f32 %v536_v27, %v407_v57  ;;  %v537_v32 = vmul.f32 %v532_v30, %v2499_v29  ;;  %v1961_v33 = vpop.f32.mrb[11].mxu1 }
 0x3f2   :  { %v1762_v33 = vld [vmem:[%s2827_s15] ss:$0 sm:$0xff] }
 0x3f3   :  { %v539_v34 = vadd.f32 %v537_v32, %v408_v58  ;;  %1970 = vmatprep.mubr.msk.f32.mxu1 %vm363_vm1, %v538_v31 }
 0x3f5   :  { %1971 = vmatmul.mubr.msk.f32.vlgmr.msra.gmra.mrb[6].mxu1 %vm363_vm1, %v539_v34 }
 0x3f6   :  { %1994 = vmatprep.mubr.msk.bf16.mxu1 %vm2230_vm4, %v2229_v13 }
 0x4c8   :  { %v1972_v37 = vpop.f32.mrb[6].mxu1 }
 0x4c9   :  { %v623_v55 = vpop.f32.mrb[7].mxu1  ;;  %v629_v39 = vadd.f32 %v1972_v37, %v1757_v36 }
 0x4ca   :  { %v624_v57 = vadd.f32 %v1757_v36, %v623_v55 }
 0x4cb   :  { %v638_v54 = vsel %vm634_vm2, %v629_v39, 0.0 }
 0x4cc   :  { %v635_v40 = vsel %vm634_vm2, %v624_v57, 0.0 }
 0x4cd   :  { %636 = vadd.xlane.f32.xlu1 %v635_v40 }
 0x4d1   :  { %639 = vadd.xlane.f32.xlu1 %v638_v54 }
 0x55a   :  { %v637_v58 = vpop.xlane.xlu1 %636 }
 0x55b   :  { %v642_v41 = vmul.f32 0.015625, %v637_v58 }
 0x55d   :  { %v644_v42 = vsub.f32 %v624_v57, %v642_v41 }
 0x55e   :  { %v640_v43 = vpop.xlane.xlu1 %639 }
 0x55f   :  { %v643_v44 = vmul.f32 0.015625, %v640_v43  ;;  %v646_v45 = vmul.f32 %v644_v42, %v644_v42 }
 0x561   :  { %v645_v46 = vsub.f32 %v629_v39, %v643_v44  ;;  %v648_v47 = vsel %vm634_vm2, %v646_v45, 0.0 }
 0x562   :  { %649 = vadd.xlane.f32.xlu0 %v648_v47 }
 0x563   :  { %v647_v49 = vmul.f32 %v645_v46, %v645_v46 }
 0x565   :  { %v651_v50 = vsel %vm634_vm2, %v647_v49, 0.0 }
 0x566   :  { %652 = vadd.xlane.f32.xlu1 %v651_v50 }
 0x5ef   :  { %v650_v7 = vpop.xlane.xlu0 %649 }
 0x5f0   :  { %v654_v10 = vmul.f32 0.015625, %v650_v7 }
 0x5f2   :  { %v656_v11 = vadd.f32 1e-05, %v654_v10 }
 0x5f3   :  { %v653_v12 = vpop.xlane.xlu1 %652 }
 0x5f4   :  { %2204 = vrsqrt.f32 %v656_v11  ;;  %v655_v14 = vmul.f32 0.015625, %v653_v12 }
 0x5f6   :  { %v657_v15 = vadd.f32 1e-05, %v655_v14 }
 0x5f8   :  { %2206 = vrsqrt.f32 %v657_v15 }
 0x5fe   :  { %v2205_v16 = vpop.eup %2204 }
 0x5ff   :  { %v660_v18 = vmul.f32 %v2205_v16, %v644_v42 }
 0x601   :  { %v668_v20 = vmul.f32 %v1760_v17, %v660_v18 }
 0x602   :  { %v2207_v22 = vpop.eup %2206 }
 0x603   :  { %v661_v24 = vmul.f32 %v2207_v22, %v645_v46  ;;  %v676_v27 = vadd.f32 %v1761_v19, %v668_v20 }
 0x605   :  { %v669_v28 = vmul.f32 %v1760_v17, %v661_v24  ;;  %v678_v30 = vmax.f32 %v676_v27, 0.0 }
 0x607   :  { %v677_v31 = vadd.f32 %v1761_v19, %v669_v28  ;;  %1989 = vmatprep.mubr.msk.f32.mxu0 %vm634_vm2, %v678_v30 }
 0x609   :  { %v679_v32 = vmax.f32 %v677_v31, 0.0 }
 0x60b   :  { %1990 = vmatmul.mubr.msk.f32.vlgmr.msra.gmra.mrb[2].mxu0 %vm634_vm2, %v679_v32 }
 0x60c   :  { %2012 = vmatprep.mubr.msk.bf16.mxu0 %vm2230_vm4, %v2229_v13 }
 0x6de   :  { %v1991_v34 = vpop.f32.mrb[2].mxu0 }
 0x6df   :  { %v773_v36 = vadd.f32 %v1991_v34, %v1762_v33  ;;  %v767_v37 = vpop.f32.mrb[3].mxu0 }
 0x6e0   :  { %v768_v55 = vadd.f32 %v1762_v33, %v767_v37 }
 0x6e1   :  { %v2556_v57 = vadd.f32 %v773_v36, %v2353_v9 }
 0x6e2   :  { %v2559_v39 = vadd.f32 %v768_v55, %v2351_v8 }
 0x6e3   :  { %v785_v40 = vsel %vm363_vm1, %v2556_v57, 0.0 }
 0x6e4   :  { %786 = vadd.xlane.f32.xlu1 %v785_v40  ;;  %v782_v54 = vsel %vm363_vm1, %v2559_v39, 0.0 }
 0x6e5   :  { %783 = vadd.xlane.f32.xlu0 %v782_v54 }
 0x771   :  { %v787_v58 = vpop.xlane.xlu1 %786 }
 0x772   :  { %v789_v41 = vmul.f32 0.03125, %v787_v58  ;;  %v784_v42 = vpop.xlane.xlu0 %783 }
 0x773   :  { %v788_v43 = vmul.f32 0.03125, %v784_v42 }
 0x774   :  { %v791_v44 = vsub.f32 %v2556_v57, %v789_v41 }
 0x775   :  { %v790_v9 = vsub.f32 %v2559_v39, %v788_v43 }
 0x776   :  { %v793_v45 = vmul.f32 %v791_v44, %v791_v44 }
 0x777   :  { %v792_v46 = vmul.f32 %v790_v9, %v790_v9 }
 0x778   :  { %v797_v8 = vsel %vm363_vm1, %v793_v45, 0.0 }
 0x779   :  { %798 = vadd.xlane.f32.xlu1 %v797_v8  ;;  %v794_v47 = vsel %vm363_vm1, %v792_v46, 0.0 }
 0x77a   :  { %795 = vadd.xlane.f32.xlu0 %v794_v47 }
 0x806   :  { %v799_v49 = vpop.xlane.xlu1 %798 }
 0x807   :  { %v801_v50 = vmul.f32 0.03125, %v799_v49  ;;  %v796_v52 = vpop.xlane.xlu0 %795  ;;  %v1773_v49 = vld [vmem:[%s2822_s10 + $0x20] sm:$0xff] }
 0x808   :  { %v800_v53 = vmul.f32 0.03125, %v796_v52 }
 0x809   :  { %v803_v56 = vadd.f32 1e-05, %v801_v50  ;;  %v1774_v50 = vld [vmem:[%s2822_s10 + $0x28] sm:$0xff] }
 0x80a   :  { %v802_v59 = vadd.f32 1e-05, %v800_v53 }
 0x80b   :  { %2208 = vrsqrt.f32 %v803_v56  ;;  %v2135_v56 = vpack.c.bf16 %v1774_v50, %v1773_v49 }
 0x80c   :  { %2210 = vrsqrt.f32 %v802_v59 }
 0x815   :  { %v2209_v60 = vpop.eup %2208 }
 0x816   :  { %v2211_v63 = vpop.eup %2210  ;;  %v807_v0 = vmul.f32 %v2209_v60, %v791_v44  ;;  %v1775_v60 = vld [vmem:[%s2822_s10 + $0x30] sm:$0xff] }
 0x817   :  { %v806_v1 = vmul.f32 %v2211_v63, %v790_v9 }
 0x818   :  { %v815_v4 = vmul.f32 %v1767_v61, %v807_v0 }
 0x819   :  { %v814_v5 = vmul.f32 %v1767_v61, %v806_v1  ;;  %v1776_v61 = vld [vmem:[%s2822_s10 + $0x38] sm:$0xff] }
 0x81a   :  { %v2575_v7 = vadd.f32 %v1768_v2, %v815_v4  ;;  %v2139_v63 = vpack.c.bf16 %v1776_v61, %v1775_v60  ;;  %v1784_v61 = vld [vmem:[%s2826_s13 + $0x1] ss:$0 sm:$0xff] }
 0x81b   :  { %v2577_v10 = vadd.f32 %v1768_v2, %v814_v5 }
 0x81c   :  { %v825_v11 = vmax.f32 %v2575_v7, 0.0 }
 0x81d   :  { %v824_v12 = vmax.f32 %v2577_v10, 0.0 }
 0x81f   :  { %v826_v14 = vpack.c.bf16 %v825_v11, %v824_v12 }
 0x821   :  { %1993 = vmatpush3.bf16.msra.mxu1 %v826_v14 }
 0x824   :  { %1995 = vmatmul.mubr.msk.bf16.vlgmr.msra.gmra.mrb[12].mxu1 %vm410_vm7, %v2429_v62 }
 0x825   :  { %1998 = vmatprep.mubr.msk.bf16.mxu1 %vm2230_vm4, %v2229_v13 }
 0x82c   :  { %1999 = vmatmul.mubr.msk.bf16.gmra.mrb[16].mxu1 %vm410_vm7, %v2437_v3 }
 0x82d   :  { %2002 = vmatprep.mubr.msk.bf16.mxu1 %vm2230_vm4, %v2229_v13 }
 0x834   :  { %2003 = vmatmul.mubr.msk.bf16.gmra.mrb[20].mxu1 %vm410_vm7, %v2445_v6 }
 0x8f7   :  { %v861_v15 = vpop.f32.mrb[12].mxu1 }
 0x8f8   :  { %v862_v16 = vadd.f32 %v861_v15, %v2461_v25  ;;  %v1996_v17 = vpop.f32.mrb[13].mxu1 }
 0x8f9   :  { %v864_v18 = vpop.f32.mrb[14].mxu1 }
 0x8fa   :  { %v884_v19 = vmax.f32 %v862_v16, 0.0  ;;  %v865_v20 = vadd.f32 %v864_v18, %v2463_v26  ;;  %v1997_v22 = vpop.f32.mrb[15].mxu1  ;;  %v1778_v16 = vld [vmem:[%s2823_s11 + $0x1] ss:$0 sm:$0xff] }
 0x8fc   :  { %v885_v24 = vmax.f32 %v865_v20, 0.0  ;;  %v890_v27 = vadd.f32 1e-07, %v884_v19 }
 0x8fe   :  { %v891_v28 = vadd.f32 1e-07, %v885_v24 }
 0x8ff   :  { %v869_v30 = vpop.f32.mrb[16].mxu1 }
 0x900   :  { %v896_v31 = vpack.c.bf16 %v891_v28, %v890_v27  ;;  %v870_v32 = vadd.f32 %v869_v30, %v2467_v35  ;;  %v2000_v33 = vpop.f32.mrb[17].mxu1 }
 0x901   :  { %v872_v34 = vpop.f32.mrb[18].mxu1 }
 0x902   :  { %v886_v36 = vmax.f32 %v870_v32, 0.0  ;;  %v873_v37 = vadd.f32 %v872_v34, %v2469_v38  ;;  %v2001_v55 = vpop.f32.mrb[19].mxu1  ;;  %2007 = vmatpush3.bf16.msra.mxu0 %v896_v31 }
 0x903   :  { %2008 = vmatprep.subr.bf16.mxu0 %v2229_v13 }
 0x904   :  { %v887_v40 = vmax.f32 %v873_v37, 0.0  ;;  %v892_v54 = vadd.f32 1e-07, %v886_v36  ;;  %v1785_v36 = vld [vmem:[%s2824_s14 + $0x40] sm:$0xff]  ;;  %v1786_v37 = vld [vmem:[%s2824_s14 + $0x48] sm:$0xff] }
 0x905   :  { %v2143_v55 = vpack.c.bf16 %v1786_v37, %v1785_v36 }
 0x906   :  { %v893_v58 = vadd.f32 1e-07, %v887_v40  ;;  %v1787_v40 = vld [vmem:[%s2824_s14 + $0x50] sm:$0xff] }
 0x907   :  { %v877_v41 = vpop.f32.mrb[20].mxu1  ;;  %2144 = vmatprep.subr.bf16.mxu1 %v2143_v55 }
 0x908   :  { %v897_v42 = vpack.c.bf16 %v893_v58, %v892_v54  ;;  %v878_v43 = vadd.f32 %v877_v41, %v2474_v48  ;;  %v2004_v44 = vpop.f32.mrb[21].mxu1  ;;  %2146 = vmatpush3.bf16.msra.mxu1 %v2143_v55  ;;  %v1788_v54 = vld [vmem:[%s2824_s14 + $0x58] sm:$0xff]  ;;  %v1789_v41 = vld [vmem:[%s2824_s14 + $0x60] sm:$0xff] }
 0x909   :  { %v880_v9 = vpop.f32.mrb[22].mxu1  ;;  %v2147_v58 = vpack.c.bf16 %v1788_v54, %v1787_v40  ;;  %v1791_v44 = vld [vmem:[%s2824_s14 + $0x70] sm:$0xff] }
 0x90a   :  { %v888_v45 = vmax.f32 %v878_v43, 0.0  ;;  %v881_v46 = vadd.f32 %v880_v9, %v2476_v51  ;;  %v2005_v8 = vpop.f32.mrb[23].mxu1  ;;  %2009 = vmatpush3.bf16.msra.mxu0 %v897_v42  ;;  %v1790_v42 = vld [vmem:[%s2824_s14 + $0x68] sm:$0xff]  ;;  %v1792_v9 = vld [vmem:[%s2824_s14 + $0x78] sm:$0xff] }
 0x90b   :  { %2010 = vmatprep.subr.bf16.mxu0 %v2229_v13  ;;  %2148 = vmatprep.subr.bf16.mxu1 %v2147_v58  ;;  %v2151_v43 = vpack.c.bf16 %v1790_v42, %v1789_v41 }
 0x90c   :  { %v889_v47 = vmax.f32 %v881_v46, 0.0  ;;  %v894_v52 = vadd.f32 1e-07, %v888_v45  ;;  %2150 = vmatpush3.bf16.msra.mxu1 %v2147_v58  ;;  %v2155_v45 = vpack.c.bf16 %v1792_v9, %v1791_v44  ;;  %v1799_v58 = vld [vmem:[%s2818_s8 + $0x2] ss:$0 sm:$0xff] }
 0x90d   :  { %2152 = vmatprep.subr.bf16.mxu1 %v2151_v43  ;;  %v1800_v44 = vld [vmem:[%s2819_s9 + $0x2] ss:$0 sm:$0xff] }
 0x90e   :  { %v895_v53 = vadd.f32 1e-07, %v889_v47 }
 0x910   :  { %v898_v59 = vpack.c.bf16 %v895_v53, %v894_v52  ;;  %2154 = vmatpush3.bf16.msra.mxu1 %v2151_v43 }
 0x911   :  { %2156 = vmatprep.subr.bf16.mxu1 %v2155_v45 }
 0x912   :  { %2011 = vmatpush3.bf16.msra.mxu0 %v898_v59 }
 0x913   :  { %2136 = vmatprep.subr.bf16.mxu0 %v2135_v56 }
 0x914   :  { %2158 = vmatpush3.bf16.msra.mxu1 %v2155_v45 }
 0x915   :  { %2013 = vmatmul.mubr.msk.bf16.vlgmr.msra.gmra.mrb[16].mxu0 %vm344_vm14, %v2454_v21  ;;  %2060 = vmatprep.subr.bf16.mxu1 %v2229_v13 }
 0x916   :  { %2138 = vmatpush3.bf16.msra.mxu0 %v2135_v56  ;;  %v1783_v56 = vld [vmem:[%s2825_s12 + $0x1] ss:$0 sm:$0xff] }
 0x917   :  { %2140 = vmatprep.subr.bf16.mxu0 %v2139_v63 }
 0x91a   :  { %2142 = vmatpush3.bf16.msra.mxu0 %v2139_v63 }
 0x91b   :  { %2046 = vmatprep.subr.bf16.mxu0 %v2229_v13 }
 0x9e8   :  { %v933_v0 = vpop.f32.mrb[16].mxu0 }
 0x9e9   :  { %v940_v1 = vmul.f32 %v933_v0, %v2496_v23  ;;  %v2014_v2 = vpop.f32.mrb[17].mxu0 }
 0x9ea   :  { %v936_v4 = vpop.f32.mrb[18].mxu0 }
 0x9eb   :  { %v942_v5 = vadd.f32 %v940_v1, %v824_v12  ;;  %v941_v10 = vmul.f32 %v936_v4, %v2499_v29  ;;  %v2015_v14 = vpop.f32.mrb[19].mxu0 }
 0x9ec   :  { %v1794_v14 = vld [vmem:[%s2827_s15 + $0x1] ss:$0 sm:$0xff] }
 0x9ed   :  { %v943_v15 = vadd.f32 %v941_v10, %v825_v11  ;;  %2024 = vmatprep.mubr.msk.f32.mxu0 %vm363_vm1, %v942_v5 }
 0x9ef   :  { %2025 = vmatmul.mubr.msk.f32.vlgmr.msra.gmra.mrb[20].mxu0 %vm363_vm1, %v943_v15 }
 0x9f0   :  { %2048 = vmatprep.mubr.msk.bf16.mxu0 %vm2230_vm4, %v2229_v13 }
 0xac2   :  { %v2026_v17 = vpop.f32.mrb[20].mxu0 }
 0xac3   :  { %v1035_v18 = vadd.f32 %v2026_v17, %v1778_v16  ;;  %v1029_v12 = vpop.f32.mrb[21].mxu0 }
 0xac4   :  { %v1030_v19 = vadd.f32 %v1778_v16, %v1029_v12 }
 0xac5   :  { %v1045_v20 = vsel %vm634_vm2, %v1035_v18, 0.0 }
 0xac6   :  { %1046 = vadd.xlane.f32.xlu1 %v1045_v20  ;;  %v1042_v7 = vsel %vm634_vm2, %v1030_v19, 0.0 }
 0xac7   :  { %1043 = vadd.xlane.f32.xlu0 %v1042_v7 }
 0xb53   :  { %v1047_v11 = vpop.xlane.xlu1 %1046 }
 0xb54   :  { %v1049_v22 = vmul.f32 0.015625, %v1047_v11  ;;  %v1044_v24 = vpop.xlane.xlu0 %1043 }
 0xb55   :  { %v1048_v27 = vmul.f32 0.015625, %v1044_v24 }
 0xb56   :  { %v1051_v28 = vsub.f32 %v1035_v18, %v1049_v22 }
 0xb57   :  { %v1050_v30 = vsub.f32 %v1030_v19, %v1048_v27 }
 0xb58   :  { %v1053_v31 = vmul.f32 %v1051_v28, %v1051_v28 }
 0xb59   :  { %v1052_v32 = vmul.f32 %v1050_v30, %v1050_v30 }
 0xb5a   :  { %v1057_v33 = vsel %vm634_vm2, %v1053_v31, 0.0 }
 0xb5b   :  { %1058 = vadd.xlane.f32.xlu1 %v1057_v33  ;;  %v1054_v34 = vsel %vm634_vm2, %v1052_v32, 0.0 }
 0xb5c   :  { %1055 = vadd.xlane.f32.xlu0 %v1054_v34 }
 0xbe8   :  { %v1059_v46 = vpop.xlane.xlu1 %1058 }
 0xbe9   :  { %v1061_v8 = vmul.f32 0.015625, %v1059_v46  ;;  %v1056_v47 = vpop.xlane.xlu0 %1055 }
 0xbea   :  { %v1060_v49 = vmul.f32 0.015625, %v1056_v47 }
 0xbeb   :  { %v1063_v50 = vadd.f32 1e-05, %v1061_v8 }
 0xbec   :  { %v1062_v52 = vadd.f32 1e-05, %v1060_v49 }
 0xbed   :  { %2212 = vrsqrt.f32 %v1063_v50 }
 0xbee   :  { %2214 = vrsqrt.f32 %v1062_v52 }
 0xbf7   :  { %v2213_v53 = vpop.eup %2212 }
 0xbf8   :  { %v2215_v59 = vpop.eup %2214  ;;  %v1067_v60 = vmul.f32 %v2213_v53, %v1051_v28 }
 0xbf9   :  { %v1066_v63 = vmul.f32 %v2215_v59, %v1050_v30 }
 0xbfa   :  { %v1075_v0 = vmul.f32 %v1783_v56, %v1067_v60 }
 0xbfb   :  { %v1074_v1 = vmul.f32 %v1783_v56, %v1066_v63 }
 0xbfc   :  { %v1083_v2 = vadd.f32 %v1784_v61, %v1075_v0 }
 0xbfd   :  { %v1082_v4 = vadd.f32 %v1784_v61, %v1074_v1 }
 0xbfe   :  { %v1085_v10 = vmax.f32 %v1083_v2, 0.0 }
 0xbff   :  { %v1084_v5 = vmax.f32 %v1082_v4, 0.0 }
 0xc01   :  { %2043 = vmatprep.mubr.msk.f32.mxu1 %vm634_vm2, %v1084_v5 }
 0xc02   :  { %2044 = vmatmul.mubr.msk.f32.vlgmr.msra.gmra.mrb[24].mxu1 %vm634_vm2, %v1085_v10 }
 0xc03   :  { %2066 = vmatprep.mubr.msk.bf16.mxu1 %vm2230_vm4, %v2229_v13 }
 0xcd5   :  { %v2045_v15 = vpop.f32.mrb[24].mxu1 }
 0xcd6   :  { %v1181_v16 = vadd.f32 %v2045_v15, %v1794_v14  ;;  %v1175_v17 = vpop.f32.mrb[25].mxu1 }
 0xcd7   :  { %v1176_v18 = vadd.f32 %v1794_v14, %v1175_v17 }
 0xcd8   :  { %v2670_v12 = vadd.f32 %v1181_v16, %v2556_v57 }
 0xcd9   :  { %v2673_v19 = vadd.f32 %v1176_v18, %v2559_v39 }
 0xcda   :  { %v1193_v20 = vsel %vm363_vm1, %v2670_v12, 0.0 }
 0xcdb   :  { %1194 = vadd.xlane.f32.xlu1 %v1193_v20  ;;  %v1190_v7 = vsel %vm363_vm1, %v2673_v19, 0.0 }
 0xcdc   :  { %1191 = vadd.xlane.f32.xlu0 %v1190_v7 }
 0xd68   :  { %v1195_v11 = vpop.xlane.xlu1 %1194 }
 0xd69   :  { %v1197_v22 = vmul.f32 0.03125, %v1195_v11  ;;  %v1192_v24 = vpop.xlane.xlu0 %1191 }
 0xd6a   :  { %v1196_v27 = vmul.f32 0.03125, %v1192_v24 }
 0xd6b   :  { %v1199_v28 = vsub.f32 %v2670_v12, %v1197_v22 }
 0xd6c   :  { %v1198_v57 = vsub.f32 %v2673_v19, %v1196_v27  ;;  %v1805_v27 = vld [vmem:[%s2822_s10 + $0x40] sm:$0xff] }
 0xd6d   :  { %v1201_v30 = vmul.f32 %v1199_v28, %v1199_v28 }
 0xd6e   :  { %v1200_v31 = vmul.f32 %v1198_v57, %v1198_v57 }
 0xd6f   :  { %v1205_v39 = vsel %vm363_vm1, %v1201_v30, 0.0 }
 0xd70   :  { %1206 = vadd.xlane.f32.xlu1 %v1205_v39  ;;  %v1202_v32 = vsel %vm363_vm1, %v1200_v31, 0.0 }
 0xd71   :  { %1203 = vadd.xlane.f32.xlu0 %v1202_v32 }
 0xdfd   :  { %v1207_v33 = vpop.xlane.xlu1 %1206 }
 0xdfe   :  { %v1209_v34 = vmul.f32 0.03125, %v1207_v33  ;;  %v1204_v36 = vpop.xlane.xlu0 %1203 }
 0xdff   :  { %v1208_v37 = vmul.f32 0.03125, %v1204_v36 }
 0xe00   :  { %v1211_v55 = vadd.f32 1e-05, %v1209_v34 }
 0xe01   :  { %v1210_v40 = vadd.f32 1e-05, %v1208_v37 }
 0xe02   :  { %2216 = vrsqrt.f32 %v1211_v55 }
 0xe03   :  { %2218 = vrsqrt.f32 %v1210_v40 }
 0xe0c   :  { %v2217_v54 = vpop.eup %2216 }
 0xe0d   :  { %v2219_v41 = vpop.eup %2218  ;;  %v1215_v42 = vmul.f32 %v2217_v54, %v1199_v28  ;;  %v1806_v28 = vld [vmem:[%s2822_s10 + $0x48] sm:$0xff]  ;;  %v1810_v54 = vld [vmem:[%s2823_s11 + $0x2] ss:$0 sm:$0xff] }
 0xe0e   :  { %v1214_v43 = vmul.f32 %v2219_v41, %v1198_v57  ;;  %v2159_v30 = vpack.c.bf16 %v1806_v28, %v1805_v27 }
 0xe0f   :  { %v1223_v9 = vmul.f32 %v1799_v58, %v1215_v42 }
 0xe10   :  { %v1222_v45 = vmul.f32 %v1799_v58, %v1214_v43 }
 0xe11   :  { %v2689_v46 = vadd.f32 %v1800_v44, %v1223_v9 }
 0xe12   :  { %v2691_v8 = vadd.f32 %v1800_v44, %v1222_v45 }
 0xe13   :  { %v1233_v47 = vmax.f32 %v2689_v46, 0.0 }
 0xe14   :  { %v1232_v49 = vmax.f32 %v2691_v8, 0.0 }
 0xe16   :  { %v1234_v50 = vpack.c.bf16 %v1233_v47, %v1232_v49 }
 0xe18   :  { %2047 = vmatpush3.bf16.msra.mxu0 %v1234_v50 }
 0xe1b   :  { %2049 = vmatmul.mubr.msk.bf16.vlgmr.msra.gmra.mrb[24].mxu0 %vm410_vm7, %v2429_v62 }
 0xe1c   :  { %2052 = vmatprep.mubr.msk.bf16.mxu0 %vm2230_vm4, %v2229_v13 }
 0xe23   :  { %2053 = vmatmul.mubr.msk.bf16.gmra.mrb[28].mxu0 %vm410_vm7, %v2437_v3 }
 0xe24   :  { %2056 = vmatprep.mubr.msk.bf16.mxu0 %vm2230_vm4, %v2229_v13 }
 0xe2b   :  { %2057 = vmatmul.mubr.msk.bf16.gmra.mrb[32].mxu0 %vm410_vm7, %v2445_v6 }
 0xeee   :  { %v1269_v52 = vpop.f32.mrb[24].mxu0 }
 0xeef   :  { %v1270_v53 = vadd.f32 %v1269_v52, %v2461_v25  ;;  %v2050_v56 = vpop.f32.mrb[25].mxu0 }
 0xef0   :  { %v1272_v59 = vpop.f32.mrb[26].mxu0  ;;  %v1817_v56 = vld [vmem:[%s2824_s14 + $0x80] sm:$0xff] }
 0xef1   :  { %v1292_v60 = vmax.f32 %v1270_v53, 0.0  ;;  %v1273_v62 = vadd.f32 %v1272_v59, %v2463_v26  ;;  %v2051_v61 = vpop.f32.mrb[27].mxu0  ;;  %v1818_v59 = vld [vmem:[%s2824_s14 + $0x88] sm:$0xff] }
 0xef2   :  { %v1820_v61 = vld [vmem:[%s2824_s14 + $0x98] sm:$0xff] }
 0xef3   :  { %v1293_v63 = vmax.f32 %v1273_v62, 0.0  ;;  %v1298_v0 = vadd.f32 1e-07, %v1292_v60  ;;  %v2167_v60 = vpack.c.bf16 %v1818_v59, %v1817_v56  ;;  %v1819_v62 = vld [vmem:[%s2824_s14 + $0x90] sm:$0xff] }
 0xef5   :  { %v1299_v1 = vadd.f32 1e-07, %v1293_v63  ;;  %2168 = vmatprep.subr.bf16.mxu0 %v2167_v60  ;;  %v2171_v63 = vpack.c.bf16 %v1820_v61, %v1819_v62 }
 0xef6   :  { %v1277_v2 = vpop.f32.mrb[28].mxu0  ;;  %2170 = vmatpush3.bf16.msra.mxu0 %v2167_v60  ;;  %v1830_v60 = vld [vmem:[%s2830_s17] ss:$0 sm:$0xff] }
 0xef7   :  { %v1304_v3 = vpack.c.bf16 %v1299_v1, %v1298_v0  ;;  %v1278_v4 = vadd.f32 %v1277_v2, %v2467_v35  ;;  %v2054_v5 = vpop.f32.mrb[29].mxu0  ;;  %2172 = vmatprep.subr.bf16.mxu0 %v2171_v63  ;;  %v1821_v0 = vld [vmem:[%s2824_s14 + $0xa0] sm:$0xff]  ;;  %v1822_v1 = vld [vmem:[%s2824_s14 + $0xa8] sm:$0xff] }
 0xef8   :  { %v1280_v10 = vpop.f32.mrb[30].mxu0  ;;  %v2175_v2 = vpack.c.bf16 %v1822_v1, %v1821_v0 }
 0xef9   :  { %v1294_v14 = vmax.f32 %v1278_v4, 0.0  ;;  %v1281_v6 = vadd.f32 %v1280_v10, %v2469_v38  ;;  %v2055_v15 = vpop.f32.mrb[31].mxu0  ;;  %2061 = vmatpush3.bf16.msra.mxu1 %v1304_v3  ;;  %v1823_v3 = vld [vmem:[%s2824_s14 + $0xb0] sm:$0xff]  ;;  %v1824_v4 = vld [vmem:[%s2824_s14 + $0xb8] sm:$0xff] }
 0xefa   :  { %2062 = vmatprep.subr.bf16.mxu1 %v2229_v13  ;;  %2174 = vmatpush3.bf16.msra.mxu0 %v2171_v63  ;;  %v2179_v5 = vpack.c.bf16 %v1824_v4, %v1823_v3  ;;  %v1831_v3 = vld [vmem:[%s2831_s19] ss:$0 sm:$0xff] }
 0xefb   :  { %v1295_v25 = vmax.f32 %v1281_v6, 0.0  ;;  %v1300_v16 = vadd.f32 1e-07, %v1294_v14  ;;  %2176 = vmatprep.subr.bf16.mxu0 %v2175_v2 }
 0xefd   :  { %v1301_v26 = vadd.f32 1e-07, %v1295_v25 }
 0xefe   :  { %v1285_v17 = vpop.f32.mrb[32].mxu0  ;;  %2178 = vmatpush3.bf16.msra.mxu0 %v2175_v2 }
 0xeff   :  { %v1305_v18 = vpack.c.bf16 %v1301_v26, %v1300_v16  ;;  %v1286_v20 = vadd.f32 %v1285_v17, %v2474_v48  ;;  %v2058_v7 = vpop.f32.mrb[33].mxu0  ;;  %2180 = vmatprep.subr.bf16.mxu0 %v2179_v5  ;;  %v1815_v17 = vld [vmem:[%s2825_s12 + $0x2] ss:$0 sm:$0xff] }
 0xf00   :  { %v1288_v11 = vpop.f32.mrb[34].mxu0  ;;  %v1816_v7 = vld [vmem:[%s2826_s13 + $0x2] ss:$0 sm:$0xff] }
 0xf01   :  { %v1296_v22 = vmax.f32 %v1286_v20, 0.0  ;;  %v1289_v35 = vadd.f32 %v1288_v11, %v2476_v51  ;;  %v2059_v24 = vpop.f32.mrb[35].mxu0  ;;  %2063 = vmatpush3.bf16.msra.mxu1 %v1305_v18  ;;  %v1808_v51 = vld [vmem:[%s2822_s10 + $0x58] sm:$0xff] }
 0xf02   :  { %2064 = vmatprep.subr.bf16.mxu1 %v2229_v13  ;;  %v1807_v13 = vld [vmem:[%s2822_s10 + $0x50] sm:$0xff]  ;;  %2182 = vmatpush3.bf16.msra.mxu0 %v2179_v5 }
 0xf03   :  { %v1297_v38 = vmax.f32 %v1289_v35, 0.0  ;;  %v1302_v57 = vadd.f32 1e-07, %v1296_v22  ;;  %v2163_v39 = vpack.c.bf16 %v1808_v51, %v1807_v13 }
 0xf05   :  { %v1303_v48 = vadd.f32 1e-07, %v1297_v38 }
 0xf07   :  { %v1306_v31 = vpack.c.bf16 %v1303_v48, %v1302_v57  ;;  %v1826_v57 = vld [vmem:[%s2827_s15 + $0x2] ss:$0 sm:$0xff] }
 0xf09   :  { %2065 = vmatpush3.bf16.msra.mxu1 %v1306_v31 }
 0xf0a   :  { %2160 = vmatprep.subr.bf16.mxu1 %v2159_v30 }
 0xf0c   :  { %2067 = vmatmul.mubr.msk.bf16.vlgmr.msra.gmra.mrb[28].mxu1 %vm344_vm14, %v2454_v21 }
 0xf0d   :  { %2162 = vmatpush3.bf16.msra.mxu1 %v2159_v30 }
 0xf0e   :  { %2164 = vmatprep.subr.bf16.mxu1 %v2163_v39 }
 0xf11   :  { %2166 = vmatpush3.bf16.msra.mxu1 %v2163_v39 }
 0xfdf   :  { %v1341_v32 = vpop.f32.mrb[28].mxu1 }
 0xfe0   :  { %v1348_v33 = vmul.f32 %v1341_v32, %v2496_v23  ;;  %v2068_v34 = vpop.f32.mrb[29].mxu1 }
 0xfe1   :  { %v1344_v36 = vpop.f32.mrb[30].mxu1 }
 0xfe2   :  { %v1350_v37 = vadd.f32 %v1348_v33, %v1232_v49  ;;  %v1349_v21 = vmul.f32 %v1344_v36, %v2499_v29  ;;  %v2069_v55 = vpop.f32.mrb[31].mxu1 }
 0xfe4   :  { %v1351_v40 = vadd.f32 %v1349_v21, %v1233_v47  ;;  %2078 = vmatprep.mubr.msk.f32.mxu1 %vm363_vm1, %v1350_v37 }
 0xfe6   :  { %2079 = vmatmul.mubr.msk.f32.vlgmr.msra.gmra.mrb[26].mxu1 %vm363_vm1, %v1351_v40 }
0x10b9   :  { %v2080_v58 = vpop.f32.mrb[26].mxu1 }
0x10ba   :  { %v1443_v41 = vadd.f32 %v2080_v58, %v1810_v54  ;;  %v1437_v23 = vpop.f32.mrb[27].mxu1 }
0x10bb   :  { %v1438_v42 = vadd.f32 %v1810_v54, %v1437_v23  ;;  %v1641_v23 = vld [vmem:[%s2828_s18 + $0x8] sm:$0xff] }
0x10bc   :  { %v1453_v43 = vsel %vm634_vm2, %v1443_v41, 0.0 }
0x10bd   :  { %1454 = vadd.xlane.f32.xlu1 %v1453_v43  ;;  %v1450_v29 = vsel %vm634_vm2, %v1438_v42, 0.0  ;;  %v1642_v43 = vld [vmem:[%s2828_s18 + $0x10] sm:$0xff] }
0x10be   :  { %1451 = vadd.xlane.f32.xlu0 %v1450_v29  ;;  %v1643_v29 = vld [vmem:[%s2828_s18 + $0x18] sm:$0xff] }
0x114a   :  { %v1455_v44 = vpop.xlane.xlu1 %1454 }
0x114b   :  { %v1457_v9 = vmul.f32 0.015625, %v1455_v44  ;;  %v1452_v45 = vpop.xlane.xlu0 %1451  ;;  %v2187_v44 = vpack.c.bf16 %v1643_v29, %v1642_v43 }
0x114c   :  { %v1456_v46 = vmul.f32 0.015625, %v1452_v45 }
0x114d   :  { %v1459_v8 = vsub.f32 %v1443_v41, %v1457_v9 }
0x114e   :  { %v1458_v47 = vsub.f32 %v1438_v42, %v1456_v46 }
0x114f   :  { %v1461_v49 = vmul.f32 %v1459_v8, %v1459_v8 }
0x1150   :  { %v1460_v50 = vmul.f32 %v1458_v47, %v1458_v47 }
0x1151   :  { %v1465_v52 = vsel %vm634_vm2, %v1461_v49, 0.0 }
0x1152   :  { %1466 = vadd.xlane.f32.xlu1 %v1465_v52  ;;  %v1462_v53 = vsel %vm634_vm2, %v1460_v50, 0.0  ;;  %v1829_v52 = vld [vmem:[%s2829_s16] ss:$0 sm:$0xff] }
0x1153   :  { %1463 = vadd.xlane.f32.xlu0 %v1462_v53 }
0x11df   :  { %v1467_v10 = vpop.xlane.xlu1 %1466 }
0x11e0   :  { %v1469_v14 = vmul.f32 0.015625, %v1467_v10  ;;  %v1464_v6 = vpop.xlane.xlu0 %1463 }
0x11e1   :  { %v1468_v15 = vmul.f32 0.015625, %v1464_v6 }
0x11e2   :  { %v1471_v25 = vadd.f32 1e-05, %v1469_v14 }
0x11e3   :  { %v1470_v16 = vadd.f32 1e-05, %v1468_v15 }
0x11e4   :  { %2220 = vrsqrt.f32 %v1471_v25 }
0x11e5   :  { %2222 = vrsqrt.f32 %v1470_v16 }
0x11ee   :  { %v2221_v26 = vpop.eup %2220 }
0x11ef   :  { %v2223_v18 = vpop.eup %2222  ;;  %v1475_v20 = vmul.f32 %v2221_v26, %v1459_v8 }
0x11f0   :  { %v1474_v11 = vmul.f32 %v2223_v18, %v1458_v47 }
0x11f1   :  { %v1483_v22 = vmul.f32 %v1815_v17, %v1475_v20 }
0x11f2   :  { %v1482_v35 = vmul.f32 %v1815_v17, %v1474_v11 }
0x11f3   :  { %v1491_v24 = vadd.f32 %v1816_v7, %v1483_v22 }
0x11f4   :  { %v1490_v38 = vadd.f32 %v1816_v7, %v1482_v35 }
0x11f5   :  { %v1493_v28 = vmax.f32 %v1491_v24, 0.0 }
0x11f6   :  { %v1492_v27 = vmax.f32 %v1490_v38, 0.0 }
0x11f8   :  { %2097 = vmatprep.mubr.msk.f32.mxu0 %vm634_vm2, %v1492_v27 }
0x11f9   :  { %2098 = vmatmul.mubr.msk.f32.vlgmr.msra.gmra.mrb[22].mxu0 %vm634_vm2, %v1493_v28 }
0x12cc   :  { %v2099_v48 = vpop.f32.mrb[22].mxu0 }
0x12cd   :  { %v1589_v30 = vadd.f32 %v2099_v48, %v1826_v57  ;;  %v1583_v31 = vpop.f32.mrb[23].mxu0 }
0x12ce   :  { %v1584_v13 = vadd.f32 %v1826_v57, %v1583_v31 }
0x12cf   :  { %v1593_v51 = vadd.f32 %v1589_v30, %v2670_v12 }
0x12d0   :  { %v1592_v39 = vadd.f32 %v1584_v13, %v2673_v19  ;;  %v1640_v19 = vld [vmem:[%s2828_s18] sm:$0xff] }
0x12d1   :  { %v1599_v32 = vsel %vm363_vm1, %v1593_v51, 0.0  ;;  %v2183_v42 = vpack.c.bf16 %v1641_v23, %v1640_v19 }
0x12d2   :  { %1600 = vadd.xlane.f32.xlu1 %v1599_v32  ;;  %v1596_v33 = vsel %vm363_vm1, %v1592_v39, 0.0 }
0x12d3   :  { %1597 = vadd.xlane.f32.xlu0 %v1596_v33  ;;  %2184 = vmatprep.subr.bf16.mxu1 %v2183_v42 }
0x12d4   :  { %2186 = vmatpush3.bf16.msra.mxu1 %v2183_v42 }
0x12d5   :  { %2188 = vmatprep.subr.bf16.mxu1 %v2187_v44 }
0x12d8   :  { %2190 = vmatpush3.bf16.msra.mxu1 %v2187_v44 }
0x135f   :  { %v1601_v34 = vpop.xlane.xlu1 %1600 }
0x1360   :  { %v1603_v36 = vmul.f32 0.03125, %v1601_v34  ;;  %v1598_v37 = vpop.xlane.xlu0 %1597 }
0x1361   :  { %v1602_v21 = vmul.f32 0.03125, %v1598_v37 }
0x1362   :  { %v1605_v55 = vsub.f32 %v1593_v51, %v1603_v36 }
0x1363   :  { %v1604_v40 = vsub.f32 %v1592_v39, %v1602_v21 }
0x1364   :  { %v1607_v54 = vmul.f32 %v1605_v55, %v1605_v55 }
0x1365   :  { %v1606_v58 = vmul.f32 %v1604_v40, %v1604_v40 }
0x1366   :  { %v1611_v41 = vsel %vm363_vm1, %v1607_v54, 0.0 }
0x1367   :  { %1612 = vadd.xlane.f32.xlu1 %v1611_v41  ;;  %v1608_v12 = vsel %vm363_vm1, %v1606_v58, 0.0 }
0x1368   :  { %1609 = vadd.xlane.f32.xlu0 %v1608_v12 }
0x13f4   :  { %v1613_v9 = vpop.xlane.xlu1 %1612 }
0x13f5   :  { %v1615_v45 = vmul.f32 0.03125, %v1613_v9  ;;  %v1610_v46 = vpop.xlane.xlu0 %1609 }
0x13f6   :  { %v1614_v8 = vmul.f32 0.03125, %v1610_v46 }
0x13f7   :  { %v1617_v47 = vadd.f32 1e-05, %v1615_v45 }
0x13f8   :  { %v1616_v49 = vadd.f32 1e-05, %v1614_v8 }
0x13f9   :  { %2224 = vrsqrt.f32 %v1617_v47 }
0x13fa   :  { %2226 = vrsqrt.f32 %v1616_v49 }
0x1403   :  { %v2225_v50 = vpop.eup %2224 }
0x1404   :  { %v2227_v53 = vpop.eup %2226  ;;  %v1621_v56 = vmul.f32 %v2225_v50, %v1605_v55 }
0x1405   :  { %v1620_v59 = vmul.f32 %v2227_v53, %v1604_v40 }
0x1406   :  { %v1629_v62 = vmul.f32 %v1829_v52, %v1621_v56 }
0x1407   :  { %v1628_v61 = vmul.f32 %v1829_v52, %v1620_v59 }
0x1408   :  { %v1637_v63 = vadd.f32 %v1830_v60, %v1629_v62 }
0x1409   :  { %v1636_v0 = vadd.f32 %v1830_v60, %v1628_v61 }
0x140a   :  { %v1639_v2 = vmax.f32 %v1637_v63, 0.0 }
0x140b   :  { %v1638_v1 = vmax.f32 %v1636_v0, 0.0 }
0x140d   :  { %2108 = vmatprep.mubr.msk.f32.mxu1 %vm363_vm1, %v1638_v1 }
0x140e   :  { %2109 = vmatmul.mubr.msk.f32.vlgmr.msra.gmra.mrb[32].mxu1 %vm363_vm1, %v1639_v2 }
0x14e1   :  { %v2110_v4 = vpop.f32.mrb[32].mxu1 }
0x14e2   :  { %v1729_v5 = vadd.f32 %v2110_v4, %v1831_v3  ;;  %v1723_v10 = vpop.f32.mrb[33].mxu1 }
0x14e3   :  { %v1724_v14 = vadd.f32 %v1831_v3, %v1723_v10 }
0x14e4   :  { %1734 = vst.msk [vmem:[%s2832_s20 + $0x8] sm:$0xff] %vm1732_vm3, %v1729_v5 }
0x14e5   :  { %1733 = vst.msk [vmem:[%s2832_s20] sm:$0xff] %vm1732_vm3, %v1724_v14 }

</bundles_post_ra>
